<compile_context>
chip_gen: v7x
topology: tpu7x:2x2x1
jax: 0.10.0
libtpu: 0.0.40
codegen_flags: <defaults>
</compile_context>

<pallas_src>
import functools

import jax
import jax.numpy as jnp
from jax.experimental import pallas as pl
from jax.experimental.pallas import tpu as pltpu


def _resblock_kernel(xw_ref, w1_ref, b1_ref, w2s_ref, b2_ref,
                     gamma_ref, beta_ref, bskip_ref, out_ref, pad_ref,
                     *, true_h1):
    # xw_ref  : (TH1+3, W1+1, 4*Cin) bf16  space-to-depth window of the padded
    #           input (channel groups = (row parity, col parity)), incl. halo
    # w1_ref  : (9*Cin, Cout) bf16     b1_ref  : (1, Cout) f32
    # w2s_ref : (9*Cout+Cin, 2*Cout) bf16  block-diag [conv2 | skip] weights
    # gamma   : (Cout, Cout) bf16      beta / b2 / bskip : (1, Cout) f32
    # out_ref : (TH1, W1, Cout)        pad_ref : (TH1+2, W1+2, Cout) bf16
    TH1, W1, Cout = out_ref.shape
    C4 = xw_ref.shape[-1]
    Cin = C4 // 4
    R1 = TH1 + 2                    # conv1 rows computed, incl. +/-1 halo row
    M1 = R1 * W1
    M2 = TH1 * W1
    t = pl.program_id(1)

    # --- conv1: 3x3 stride 2 as ONE MXU dot, K = 9*Cin packed on lanes -----
    taps1 = []
    for di in range(3):
        for dj in range(3):
            a, b = di // 2, dj // 2
            g = (di % 2) * 2 + (dj % 2)          # parity group -> channel slot
            taps1.append(xw_ref[a:a + R1, b:b + W1,
                                g * Cin:(g + 1) * Cin].reshape(M1, Cin))
    slab1 = jnp.concatenate(taps1, axis=-1)       # (M1, 9*Cin) bf16
    out1 = jnp.dot(slab1, w1_ref[...], preferred_element_type=jnp.float32)
    out1 = out1 + b1_ref[...]
    out1 = jnp.where(out1 > 0, out1, 0.01 * out1)  # LeakyReLU(0.01), f32

    # --- stage conv1 rows into the zero-bordered conv2 scratch --------------
    # Halo rows outside the *true* image are conv2's zero padding; halo rows
    # of interior strips are genuine recomputed conv1 rows and are kept.
    gidx = t * TH1 - 1 + jax.lax.broadcasted_iota(jnp.int32, (R1, 1, 1), 0)
    valid = jnp.logical_and(gidx >= 0, gidx < true_h1)
    out1_3d = jnp.where(valid, out1.reshape(R1, W1, Cout), 0.0)
    pad_ref[:, 1:W1 + 1, :] = out1_3d.astype(pad_ref.dtype)
    zcol = jnp.zeros((R1, 1, Cout), pad_ref.dtype)
    pad_ref[:, 0:1, :] = zcol
    pad_ref[:, W1 + 1:W1 + 2, :] = zcol

    # --- conv2 (3x3 s1) + 1x1 stride-2 skip fused into ONE dot --------------
    # LHS = [9 conv2 taps | skip input] (K = 9*Cout + Cin, true channels only),
    # RHS = blockdiag(w2, wskip) so the skip matmul costs no extra MXU pass.
    taps2 = [pad_ref[di:di + TH1, dj:dj + W1, :].reshape(M2, Cout)
             for di in range(3) for dj in range(3)]
    xskip = xw_ref[1:1 + TH1, 0:W1, 3 * Cin:4 * Cin].reshape(M2, Cin)
    slab2 = jnp.concatenate(taps2 + [xskip], axis=-1)   # (M2, 9*Cout+Cin)
    res = jnp.dot(slab2, w2s_ref[...], preferred_element_type=jnp.float32)
    out2 = res[:, :Cout] + b2_ref[...]
    identity = res[:, Cout:] + bskip_ref[...]

    # --- GDN (inverse=False): y = x * rsqrt(beta + x^2 @ gamma) -------------
    # The squared activations go through the MXU in bf16 (f32 accumulation);
    # elementwise math stays in f32.
    sq = (out2 * out2).astype(gamma_ref.dtype)
    norm = jnp.dot(sq, gamma_ref[...], preferred_element_type=jnp.float32)
    norm = norm + beta_ref[...]
    out_gdn = out2 * jax.lax.rsqrt(norm)

    out_ref[...] = (out_gdn + identity).reshape(TH1, W1, Cout).astype(out_ref.dtype)


def _lanes(c):
    return ((c + 127) // 128) * 128


def _vmem_capacity():
    try:
        return int(pltpu.get_tpu_info().vmem_capacity_bytes)
    except Exception:
        return 64 * 1024 * 1024      # conservative fallback (v7x-sized)


def _vmem_estimate(th1, w1_, cin, cout, out_bytes=4):
    """Rough per-step VMEM footprint (bytes); VMEM lane-pads last dims to 128."""
    r1 = th1 + 2
    qc = w1_ + 1
    m1, m2 = r1 * w1_, th1 * w1_
    inb = 2 * (th1 + 3) * qc * _lanes(4 * cin) * 2        # input window, bf16, 2 bufs
    outb = 2 * th1 * w1_ * _lanes(cout) * out_bytes       # output tile, 2 bufs
    inter = (m1 * (_lanes(9 * cin) * 2 + _lanes(cout) * 6)    # conv1 slab + out1
             + r1 * (w1_ + 2) * _lanes(cout) * 2              # conv2 pad scratch
             + m2 * (_lanes(9 * cout + cin) * 2               # conv2/skip slab
                     + _lanes(2 * cout) * 4                   # fused dot result
                     + _lanes(cout) * 4 * 5))                 # GDN / residual temps
    return inb + outb + inter + (1 << 20)


def _choose_row_tile(batch, h1, w1_, cin, cout, budget):
    """Largest row-strip height whose working set fits the VMEM budget."""
    best = 0
    cands = sorted(set(list(range(8, min(h1, 256) + 1, 8)) + [min(h1, 256), h1]))
    for th1 in cands:
        if 0 < th1 <= h1 and _vmem_estimate(th1, w1_, cin, cout) <= budget:
            best = max(best, th1)
    if best == 0:
        for th1 in range(min(h1, 8), 0, -1):
            if _vmem_estimate(th1, w1_, cin, cout) <= budget:
                best = th1
                break
    best = max(1, best)
    # Expose >= 2 grid steps when batch == 1 so a 2-TensorCore chip has work.
    if batch == 1 and h1 > 1:
        best = min(best, -(-h1 // 2))
    return best


def residual_block_with_stride_slim(x, params, row_tile=None):
    """x: (B, H, W, Cin) float32, NHWC. Returns (B, H1, W1, Cout)."""
    B, H, W, Cin = x.shape
    Cout = params["b1"].shape[-1]
    H1 = (H - 1) // 2 + 1              # conv: k=3, stride=2, pad=1
    W1 = (W - 1) // 2 + 1
    QC = W1 + 1
    C4 = 4 * Cin

    cap = _vmem_capacity()
    budget = int(0.70 * cap)
    TH1 = int(row_tile) if row_tile is not None else _choose_row_tile(
        B, H1, W1, Cin, Cout, budget)
    TH1 = max(1, min(TH1, H1))
    nT = -(-H1 // TH1)                 # ceil -> ragged H1 handled by padding
    H1p = nT * TH1

    # --- glue: pad + space-to-depth (even/odd row x col parities -> channels)
    Rq = H1p + 3
    xpb = jnp.pad(x, ((0, 0), (3, 2 * Rq - 3 - H), (1, 2 * QC - 1 - W), (0, 0)))
    xpb = xpb.astype(jnp.bfloat16)
    xq = xpb.reshape(B, Rq, 2, QC, 2, Cin).transpose(0, 1, 3, 2, 4, 5)
    xq = xq.reshape(B, Rq, QC, C4)
    # per-strip overlapping row windows (3 halo rows per strip)
    x_strips = jnp.stack([xq[:, tt * TH1:tt * TH1 + TH1 + 3]
                          for tt in range(nT)], axis=1)  # (B,nT,TH1+3,QC,C4)

    # --- weights: bf16 MXU operands, f32 biases, true channel widths --------
    w1p = params["w1"].reshape(9 * Cin, Cout).astype(jnp.bfloat16)
    K2 = 9 * Cout + Cin
    w2r = params["w2"].reshape(9 * Cout, Cout)
    w2s = jnp.zeros((K2, 2 * Cout), jnp.float32)
    w2s = w2s.at[:9 * Cout, :Cout].set(w2r)
    w2s = w2s.at[9 * Cout:, Cout:].set(params["wskip"])
    w2s = w2s.astype(jnp.bfloat16)
    gam = params["gamma"].astype(jnp.bfloat16)
    b1 = params["b1"].reshape(1, Cout).astype(jnp.float32)
    b2 = params["b2"].reshape(1, Cout).astype(jnp.float32)
    bsk = params["bskip"].reshape(1, Cout).astype(jnp.float32)
    bet = params["beta"].reshape(1, Cout).astype(jnp.float32)

    xspec = pl.BlockSpec((None, None, TH1 + 3, QC, C4),
                         lambda b, t: (b, t, 0, 0, 0))

    def bcast(shape):
        return pl.BlockSpec(shape, lambda b, t, _n=len(shape): (0,) * _n)

    est = _vmem_estimate(TH1, W1, Cin, Cout)
    vlim = int(min(int(0.80 * cap), max(int(2.5 * est), 32 * 1024 * 1024)))

    flops = 2 * B * H1p * W1 * (9 * Cin * Cout + 9 * Cout * Cout
                                + Cout * Cout + Cin * Cout)
    ce = pl.CostEstimate(
        flops=int(flops),
        transcendentals=int(B * H1p * W1 * Cout),
        bytes_accessed=int(B * H * W * Cin * 4 + B * H1 * W1 * Cout * 4))

    out = pl.pallas_call(
        functools.partial(_resblock_kernel, true_h1=H1),
        out_shape=jax.ShapeDtypeStruct((B, H1p, W1, Cout), x.dtype),
        grid=(B, nT),
        in_specs=[xspec,
                  bcast((9 * Cin, Cout)), bcast((1, Cout)),
                  bcast((K2, 2 * Cout)), bcast((1, Cout)),
                  bcast((Cout, Cout)), bcast((1, Cout)), bcast((1, Cout))],
        out_specs=pl.BlockSpec((None, TH1, W1, Cout), lambda b, t: (b, t, 0, 0)),
        scratch_shapes=[pltpu.VMEM((TH1 + 2, W1 + 2, Cout), jnp.bfloat16)],
        compiler_params=pltpu.CompilerParams(
            dimension_semantics=("parallel", "parallel"),
            vmem_limit_bytes=vlim),
        cost_estimate=ce,
    )(x_strips, w1p, b1, w2s, b2, gam, bet, bsk)

    if H1p != H1:
        out = out[:, :H1]
    # TODO(synk): width tiling for very large W (W1 is currently untiled).
    return out


def _ref_forward(x, params):
    """Pure-JAX f32 reference (same math as the PyTorch module)."""
    dn = ("NHWC", "HWIO", "NHWC")
    out = jax.lax.conv_general_dilated(
        x, params["w1"], (2, 2), ((1, 1), (1, 1)), dimension_numbers=dn
    ) + params["b1"]
    out = jnp.where(out > 0, out, 0.01 * out)
    out = jax.lax.conv_general_dilated(
        out, params["w2"], (1, 1), ((1, 1), (1, 1)), dimension_numbers=dn
    ) + params["b2"]
    norm = jnp.einsum("bhwc,cd->bhwd", out * out, params["gamma"]) + params["beta"]
    out = out * jax.lax.rsqrt(norm)
    identity = jax.lax.conv_general_dilated(
        x, params["wskip"][None, None], (2, 2), ((0, 0), (0, 0)),
        dimension_numbers=dn,
    ) + params["bskip"]
    return out + identity


if __name__ == "__main__":
    B, H, W, Cin, Cout = 2, 16, 16, 4, 8

    key = jax.random.PRNGKey(0)
    kx, k0, k1, k2, k3, k4, k5, k6, k7 = jax.random.split(key, 9)

    x = jax.random.normal(kx, (B, H, W, Cin), jnp.float32)

    params = {
        # conv weights in HWIO (= torch OIHW transposed to (H, W, I, O))
        "w1": 0.1 * jax.random.normal(k0, (3, 3, Cin, Cout), jnp.float32),
        "b1": 0.1 * jax.random.normal(k1, (Cout,), jnp.float32),
        "w2": 0.1 * jax.random.normal(k2, (3, 3, Cout, Cout), jnp.float32),
        "b2": 0.1 * jax.random.normal(k3, (Cout,), jnp.float32),
        "wskip": 0.1 * jax.random.normal(k4, (Cin, Cout), jnp.float32),
        "bskip": 0.1 * jax.random.normal(k5, (Cout,), jnp.float32),
        # GDN params (non-negative, as enforced by compressai's reparametrizer)
        # gamma[c, d] multiplies x[..., c]^2 contribution to channel d.
        "gamma": 0.1 * jnp.eye(Cout, dtype=jnp.float32)
        + 0.01 * jnp.abs(jax.random.normal(k6, (Cout, Cout), jnp.float32)),
        "beta": jnp.ones((Cout,), jnp.float32)
        + 0.01 * jnp.abs(jax.random.normal(k7, (Cout,), jnp.float32)),
    }

    ref = _ref_forward(x, params)

    # auto-tiled path, an even multi-strip path, and a ragged-strip path
    out_auto = jax.block_until_ready(
        jax.jit(residual_block_with_stride_slim)(x, params))
    out_tiled = jax.block_until_ready(
        jax.jit(functools.partial(residual_block_with_stride_slim, row_tile=4))(
            x, params))
    out_ragged = jax.block_until_ready(
        jax.jit(functools.partial(residual_block_with_stride_slim, row_tile=3))(
            x, params))

    for name, out in (("auto", out_auto), ("tiled", out_tiled),
                      ("ragged", out_ragged)):
        assert out.shape == (B, H // 2, W // 2, Cout), (name, out.shape)
        err = float(jnp.max(jnp.abs(out - ref)))
        # Matmuls run in bf16 with f32 accumulation; 3e-2 abs covers that
        # rounding at these magnitudes while still catching indexing bugs.
        assert err < 3e-2, f"{name}: max abs err {err}"

    print("KERNEL_OK")
</pallas_src>

<mosaic_0001>
module attributes {stable_mosaic.version = 11 : i64} {
  func.func @_resblock_kernel(%arg0: i32, %arg1: i32, %arg2: memref<1x1x11x9x16xbf16, #tpu.memory_space<vmem>>, %arg3: memref<36x8xbf16, #tpu.memory_space<vmem>>, %arg4: memref<1x8xf32, #tpu.memory_space<vmem>>, %arg5: memref<76x16xbf16, #tpu.memory_space<vmem>>, %arg6: memref<1x8xf32, #tpu.memory_space<vmem>>, %arg7: memref<8x8xbf16, #tpu.memory_space<vmem>>, %arg8: memref<1x8xf32, #tpu.memory_space<vmem>>, %arg9: memref<1x8xf32, #tpu.memory_space<vmem>>, %arg10: memref<1x8x8x8xf32, #tpu.memory_space<vmem>>, %arg11: memref<10x10x8xbf16, #tpu.memory_space<vmem>>) attributes {dimension_semantics = [#tpu.dimension_semantics<parallel>, #tpu.dimension_semantics<parallel>], iteration_bounds = array<i64: 2, 1>, scalar_prefetch = 0 : i64, scratch_operands = 1 : i64, tpu.core_type = #tpu.core_type<tc>, window_params = [{transform_indices = @transform_0, window_bounds = array<i64: 1, 1, 11, 9, 16>}, {pipeline_mode = #tpu.pipeline_mode<synchronous>, transform_indices = @transform_1, window_bounds = array<i64: 36, 8>}, {pipeline_mode = #tpu.pipeline_mode<synchronous>, transform_indices = @transform_2, window_bounds = array<i64: 1, 8>}, {pipeline_mode = #tpu.pipeline_mode<synchronous>, transform_indices = @transform_3, window_bounds = array<i64: 76, 16>}, {pipeline_mode = #tpu.pipeline_mode<synchronous>, transform_indices = @transform_4, window_bounds = array<i64: 1, 8>}, {pipeline_mode = #tpu.pipeline_mode<synchronous>, transform_indices = @transform_5, window_bounds = array<i64: 8, 8>}, {pipeline_mode = #tpu.pipeline_mode<synchronous>, transform_indices = @transform_6, window_bounds = array<i64: 1, 8>}, {pipeline_mode = #tpu.pipeline_mode<synchronous>, transform_indices = @transform_7, window_bounds = array<i64: 1, 8>}, {transform_indices = @transform_8, window_bounds = array<i64: 1, 8, 8, 8>}]} {
    %c0 = arith.constant 0 : index
    %c0_0 = arith.constant 0 : index
    %c0_1 = arith.constant 0 : index
    %c0_2 = arith.constant 0 : index
    %c0_3 = arith.constant 0 : index
    %0 = vector.load %arg2[%c0, %c0_0, %c0_1, %c0_2, %c0_3] : memref<1x1x11x9x16xbf16, #tpu.memory_space<vmem>>, vector<1x1x10x8x4xbf16>
    %1 = vector.shape_cast %0 : vector<1x1x10x8x4xbf16> to vector<10x8x4xbf16>
    %2 = vector.shape_cast %1 : vector<10x8x4xbf16> to vector<80x4xbf16>
    %c0_4 = arith.constant 0 : index
    %c0_5 = arith.constant 0 : index
    %c0_6 = arith.constant 0 : index
    %c0_7 = arith.constant 0 : index
    %c4 = arith.constant 4 : index
    %3 = vector.load %arg2[%c0_4, %c0_5, %c0_6, %c0_7, %c4] : memref<1x1x11x9x16xbf16, #tpu.memory_space<vmem>>, vector<1x1x10x8x4xbf16>
    %4 = vector.shape_cast %3 : vector<1x1x10x8x4xbf16> to vector<10x8x4xbf16>
    %5 = vector.shape_cast %4 : vector<10x8x4xbf16> to vector<80x4xbf16>
    %c0_8 = arith.constant 0 : index
    %c0_9 = arith.constant 0 : index
    %c0_10 = arith.constant 0 : index
    %c1 = arith.constant 1 : index
    %c0_11 = arith.constant 0 : index
    %6 = vector.load %arg2[%c0_8, %c0_9, %c0_10, %c1, %c0_11] : memref<1x1x11x9x16xbf16, #tpu.memory_space<vmem>>, vector<1x1x10x8x4xbf16>
    %7 = vector.shape_cast %6 : vector<1x1x10x8x4xbf16> to vector<10x8x4xbf16>
    %8 = vector.shape_cast %7 : vector<10x8x4xbf16> to vector<80x4xbf16>
    %c0_12 = arith.constant 0 : index
    %c0_13 = arith.constant 0 : index
    %c0_14 = arith.constant 0 : index
    %c0_15 = arith.constant 0 : index
    %c8 = arith.constant 8 : index
    %9 = vector.load %arg2[%c0_12, %c0_13, %c0_14, %c0_15, %c8] : memref<1x1x11x9x16xbf16, #tpu.memory_space<vmem>>, vector<1x1x10x8x4xbf16>
    %10 = vector.shape_cast %9 : vector<1x1x10x8x4xbf16> to vector<10x8x4xbf16>
    %11 = vector.shape_cast %10 : vector<10x8x4xbf16> to vector<80x4xbf16>
    %c0_16 = arith.constant 0 : index
    %c0_17 = arith.constant 0 : index
    %c0_18 = arith.constant 0 : index
    %c0_19 = arith.constant 0 : index
    %c12 = arith.constant 12 : index
    %12 = vector.load %arg2[%c0_16, %c0_17, %c0_18, %c0_19, %c12] : memref<1x1x11x9x16xbf16, #tpu.memory_space<vmem>>, vector<1x1x10x8x4xbf16>
    %13 = vector.shape_cast %12 : vector<1x1x10x8x4xbf16> to vector<10x8x4xbf16>
    %14 = vector.shape_cast %13 : vector<10x8x4xbf16> to vector<80x4xbf16>
    %c0_20 = arith.constant 0 : index
    %c0_21 = arith.constant 0 : index
    %c0_22 = arith.constant 0 : index
    %c1_23 = arith.constant 1 : index
    %c8_24 = arith.constant 8 : index
    %15 = vector.load %arg2[%c0_20, %c0_21, %c0_22, %c1_23, %c8_24] : memref<1x1x11x9x16xbf16, #tpu.memory_space<vmem>>, vector<1x1x10x8x4xbf16>
    %16 = vector.shape_cast %15 : vector<1x1x10x8x4xbf16> to vector<10x8x4xbf16>
    %17 = vector.shape_cast %16 : vector<10x8x4xbf16> to vector<80x4xbf16>
    %c0_25 = arith.constant 0 : index
    %c0_26 = arith.constant 0 : index
    %c1_27 = arith.constant 1 : index
    %c0_28 = arith.constant 0 : index
    %c0_29 = arith.constant 0 : index
    %18 = vector.load %arg2[%c0_25, %c0_26, %c1_27, %c0_28, %c0_29] : memref<1x1x11x9x16xbf16, #tpu.memory_space<vmem>>, vector<1x1x10x8x4xbf16>
    %19 = vector.shape_cast %18 : vector<1x1x10x8x4xbf16> to vector<10x8x4xbf16>
    %20 = vector.shape_cast %19 : vector<10x8x4xbf16> to vector<80x4xbf16>
    %c0_30 = arith.constant 0 : index
    %c0_31 = arith.constant 0 : index
    %c1_32 = arith.constant 1 : index
    %c0_33 = arith.constant 0 : index
    %c4_34 = arith.constant 4 : index
    %21 = vector.load %arg2[%c0_30, %c0_31, %c1_32, %c0_33, %c4_34] : memref<1x1x11x9x16xbf16, #tpu.memory_space<vmem>>, vector<1x1x10x8x4xbf16>
    %22 = vector.shape_cast %21 : vector<1x1x10x8x4xbf16> to vector<10x8x4xbf16>
    %23 = vector.shape_cast %22 : vector<10x8x4xbf16> to vector<80x4xbf16>
    %c0_35 = arith.constant 0 : index
    %c0_36 = arith.constant 0 : index
    %c1_37 = arith.constant 1 : index
    %c1_38 = arith.constant 1 : index
    %c0_39 = arith.constant 0 : index
    %24 = vector.load %arg2[%c0_35, %c0_36, %c1_37, %c1_38, %c0_39] : memref<1x1x11x9x16xbf16, #tpu.memory_space<vmem>>, vector<1x1x10x8x4xbf16>
    %25 = vector.shape_cast %24 : vector<1x1x10x8x4xbf16> to vector<10x8x4xbf16>
    %26 = vector.shape_cast %25 : vector<10x8x4xbf16> to vector<80x4xbf16>
    %27 = tpu.concatenate %2, %5, %8, %11, %14, %17, %20, %23, %26 in 1 : vector<80x4xbf16>, vector<80x4xbf16>, vector<80x4xbf16>, vector<80x4xbf16>, vector<80x4xbf16>, vector<80x4xbf16>, vector<80x4xbf16>, vector<80x4xbf16>, vector<80x4xbf16> -> vector<80x36xbf16>
    %c0_40 = arith.constant 0 : index
    %c0_41 = arith.constant 0 : index
    %28 = vector.load %arg3[%c0_40, %c0_41] : memref<36x8xbf16, #tpu.memory_space<vmem>>, vector<36x8xbf16>
    %cst = arith.constant dense<0.000000e+00> : vector<80x8xf32>
    %29 = tpu.matmul %27, %28, %cst {dimension_numbers = #tpu.dot_dimension_numbers<[1], [0], [0], [1], [0, 0, 1, 1], [], []>} : vector<80x36xbf16>, vector<36x8xbf16>, vector<80x8xf32> -> vector<80x8xf32>
    %c0_42 = arith.constant 0 : index
    %c0_43 = arith.constant 0 : index
    %30 = vector.load %arg4[%c0_42, %c0_43] : memref<1x8xf32, #tpu.memory_space<vmem>>, vector<1x8xf32>
    %31 = vector.broadcast %30 : vector<1x8xf32> to vector<80x8xf32>
    %32 = arith.addf %29, %31 : vector<80x8xf32>
    %cst_44 = arith.constant 0.000000e+00 : f32
    %33 = vector.broadcast %cst_44 : f32 to vector<80x8xf32>
    %34 = arith.cmpf ogt, %32, %33 : vector<80x8xf32>
    %cst_45 = arith.constant 0.00999999977 : f32
    %35 = vector.broadcast %cst_45 : f32 to vector<80x8xf32>
    %36 = arith.mulf %35, %32 : vector<80x8xf32>
    %37 = arith.select %34, %32, %36 : vector<80x8xi1>, vector<80x8xf32>
    %c8_i32 = arith.constant 8 : i32
    %38 = arith.muli %arg1, %c8_i32 : i32
    %c1_i32 = arith.constant 1 : i32
    %39 = arith.subi %38, %c1_i32 : i32
    %40 = tpu.iota {dimensions = array<i32: 0>} : vector<10x1x1xi32>
    %41 = vector.broadcast %39 : i32 to vector<10x1x1xi32>
    %42 = arith.addi %41, %40 : vector<10x1x1xi32>
    %c0_i32 = arith.constant 0 : i32
    %43 = vector.broadcast %c0_i32 : i32 to vector<10x1x1xi32>
    %44 = arith.cmpi sge, %42, %43 : vector<10x1x1xi32>
    %c8_i32_46 = arith.constant 8 : i32
    %45 = vector.broadcast %c8_i32_46 : i32 to vector<10x1x1xi32>
    %46 = arith.cmpi slt, %42, %45 : vector<10x1x1xi32>
    %47 = arith.andi %44, %46 : vector<10x1x1xi1>
    %48 = vector.shape_cast %37 : vector<80x8xf32> to vector<10x8x8xf32>
    %cst_47 = arith.constant 0.000000e+00 : f32
    %49 = vector.shape_cast %47 : vector<10x1x1xi1> to vector<10x1x1xi1>
    %50 = vector.broadcast %49 : vector<10x1x1xi1> to vector<10x8x8xi1>
    %51 = vector.broadcast %cst_47 : f32 to vector<10x8x8xf32>
    %52 = arith.select %50, %48, %51 : vector<10x8x8xi1>, vector<10x8x8xf32>
    %53 = arith.truncf %52 : vector<10x8x8xf32> to vector<10x8x8xbf16>
    %c0_48 = arith.constant 0 : index
    %c1_49 = arith.constant 1 : index
    %c0_50 = arith.constant 0 : index
    %54 = vector.load %arg11[%c0_48, %c1_49, %c0_50] : memref<10x10x8xbf16, #tpu.memory_space<vmem>>, vector<10x8x8xbf16>
    tpu.vector_store %arg11[%c0_48, %c1_49, %c0_50], %53 {strides = array<i32>} : memref<10x10x8xbf16, #tpu.memory_space<vmem>>, vector<10x8x8xbf16>,
    %cst_51 = arith.constant 0.000000e+00 : bf16
    %55 = vector.broadcast %cst_51 : bf16 to vector<10x1x8xbf16>
    %c0_52 = arith.constant 0 : index
    %c0_53 = arith.constant 0 : index
    %c0_54 = arith.constant 0 : index
    %56 = vector.load %arg11[%c0_52, %c0_53, %c0_54] : memref<10x10x8xbf16, #tpu.memory_space<vmem>>, vector<10x1x8xbf16>
    tpu.vector_store %arg11[%c0_52, %c0_53, %c0_54], %55 {strides = array<i32>} : memref<10x10x8xbf16, #tpu.memory_space<vmem>>, vector<10x1x8xbf16>,
    %c0_55 = arith.constant 0 : index
    %c9 = arith.constant 9 : index
    %c0_56 = arith.constant 0 : index
    %57 = vector.load %arg11[%c0_55, %c9, %c0_56] : memref<10x10x8xbf16, #tpu.memory_space<vmem>>, vector<10x1x8xbf16>
    tpu.vector_store %arg11[%c0_55, %c9, %c0_56], %55 {strides = array<i32>} : memref<10x10x8xbf16, #tpu.memory_space<vmem>>, vector<10x1x8xbf16>,
    %c0_57 = arith.constant 0 : index
    %c0_58 = arith.constant 0 : index
    %c0_59 = arith.constant 0 : index
    %58 = vector.load %arg11[%c0_57, %c0_58, %c0_59] : memref<10x10x8xbf16, #tpu.memory_space<vmem>>, vector<8x8x8xbf16>
    %59 = vector.shape_cast %58 : vector<8x8x8xbf16> to vector<64x8xbf16>
    %c0_60 = arith.constant 0 : index
    %c1_61 = arith.constant 1 : index
    %c0_62 = arith.constant 0 : index
    %60 = vector.load %arg11[%c0_60, %c1_61, %c0_62] : memref<10x10x8xbf16, #tpu.memory_space<vmem>>, vector<8x8x8xbf16>
    %61 = vector.shape_cast %60 : vector<8x8x8xbf16> to vector<64x8xbf16>
    %c0_63 = arith.constant 0 : index
    %c2 = arith.constant 2 : index
    %c0_64 = arith.constant 0 : index
    %62 = vector.load %arg11[%c0_63, %c2, %c0_64] : memref<10x10x8xbf16, #tpu.memory_space<vmem>>, vector<8x8x8xbf16>
    %63 = vector.shape_cast %62 : vector<8x8x8xbf16> to vector<64x8xbf16>
    %c1_65 = arith.constant 1 : index
    %c0_66 = arith.constant 0 : index
    %c0_67 = arith.constant 0 : index
    %64 = vector.load %arg11[%c1_65, %c0_66, %c0_67] : memref<10x10x8xbf16, #tpu.memory_space<vmem>>, vector<8x8x8xbf16>
    %65 = vector.shape_cast %64 : vector<8x8x8xbf16> to vector<64x8xbf16>
    %c1_68 = arith.constant 1 : index
    %c1_69 = arith.constant 1 : index
    %c0_70 = arith.constant 0 : index
    %66 = vector.load %arg11[%c1_68, %c1_69, %c0_70] : memref<10x10x8xbf16, #tpu.memory_space<vmem>>, vector<8x8x8xbf16>
    %67 = vector.shape_cast %66 : vector<8x8x8xbf16> to vector<64x8xbf16>
    %c1_71 = arith.constant 1 : index
    %c2_72 = arith.constant 2 : index
    %c0_73 = arith.constant 0 : index
    %68 = vector.load %arg11[%c1_71, %c2_72, %c0_73] : memref<10x10x8xbf16, #tpu.memory_space<vmem>>, vector<8x8x8xbf16>
    %69 = vector.shape_cast %68 : vector<8x8x8xbf16> to vector<64x8xbf16>
    %c2_74 = arith.constant 2 : index
    %c0_75 = arith.constant 0 : index
    %c0_76 = arith.constant 0 : index
    %70 = vector.load %arg11[%c2_74, %c0_75, %c0_76] : memref<10x10x8xbf16, #tpu.memory_space<vmem>>, vector<8x8x8xbf16>
    %71 = vector.shape_cast %70 : vector<8x8x8xbf16> to vector<64x8xbf16>
    %c2_77 = arith.constant 2 : index
    %c1_78 = arith.constant 1 : index
    %c0_79 = arith.constant 0 : index
    %72 = vector.load %arg11[%c2_77, %c1_78, %c0_79] : memref<10x10x8xbf16, #tpu.memory_space<vmem>>, vector<8x8x8xbf16>
    %73 = vector.shape_cast %72 : vector<8x8x8xbf16> to vector<64x8xbf16>
    %c2_80 = arith.constant 2 : index
    %c2_81 = arith.constant 2 : index
    %c0_82 = arith.constant 0 : index
    %74 = vector.load %arg11[%c2_80, %c2_81, %c0_82] : memref<10x10x8xbf16, #tpu.memory_space<vmem>>, vector<8x8x8xbf16>
    %75 = vector.shape_cast %74 : vector<8x8x8xbf16> to vector<64x8xbf16>
    %c0_83 = arith.constant 0 : index
    %c0_84 = arith.constant 0 : index
    %c1_85 = arith.constant 1 : index
    %c0_86 = arith.constant 0 : index
    %c12_87 = arith.constant 12 : index
    %76 = vector.load %arg2[%c0_83, %c0_84, %c1_85, %c0_86, %c12_87] : memref<1x1x11x9x16xbf16, #tpu.memory_space<vmem>>, vector<1x1x8x8x4xbf16>
    %77 = vector.shape_cast %76 : vector<1x1x8x8x4xbf16> to vector<8x8x4xbf16>
    %78 = vector.shape_cast %77 : vector<8x8x4xbf16> to vector<64x4xbf16>
    %79 = tpu.concatenate %59, %61, %63, %65, %67, %69, %71, %73, %75, %78 in 1 : vector<64x8xbf16>, vector<64x8xbf16>, vector<64x8xbf16>, vector<64x8xbf16>, vector<64x8xbf16>, vector<64x8xbf16>, vector<64x8xbf16>, vector<64x8xbf16>, vector<64x8xbf16>, vector<64x4xbf16> -> vector<64x76xbf16>
    %c0_88 = arith.constant 0 : index
    %c0_89 = arith.constant 0 : index
    %80 = vector.load %arg5[%c0_88, %c0_89] : memref<76x16xbf16, #tpu.memory_space<vmem>>, vector<76x16xbf16>
    %cst_90 = arith.constant dense<0.000000e+00> : vector<64x16xf32>
    %81 = tpu.matmul %79, %80, %cst_90 {dimension_numbers = #tpu.dot_dimension_numbers<[1], [0], [0], [1], [0, 0, 1, 1], [], []>} : vector<64x76xbf16>, vector<76x16xbf16>, vector<64x16xf32> -> vector<64x16xf32>
    %82 = vector.extract_strided_slice %81 {offsets = [0, 0], sizes = [64, 8], strides = [1, 1]} : vector<64x16xf32> to vector<64x8xf32>
    %c0_91 = arith.constant 0 : index
    %c0_92 = arith.constant 0 : index
    %83 = vector.load %arg6[%c0_91, %c0_92] : memref<1x8xf32, #tpu.memory_space<vmem>>, vector<1x8xf32>
    %84 = vector.broadcast %83 : vector<1x8xf32> to vector<64x8xf32>
    %85 = arith.addf %82, %84 : vector<64x8xf32>
    %86 = vector.extract_strided_slice %81 {offsets = [0, 8], sizes = [64, 8], strides = [1, 1]} : vector<64x16xf32> to vector<64x8xf32>
    %c0_93 = arith.constant 0 : index
    %c0_94 = arith.constant 0 : index
    %87 = vector.load %arg9[%c0_93, %c0_94] : memref<1x8xf32, #tpu.memory_space<vmem>>, vector<1x8xf32>
    %88 = vector.broadcast %87 : vector<1x8xf32> to vector<64x8xf32>
    %89 = arith.addf %86, %88 : vector<64x8xf32>
    %90 = arith.mulf %85, %85 : vector<64x8xf32>
    %91 = arith.truncf %90 : vector<64x8xf32> to vector<64x8xbf16>
    %c0_95 = arith.constant 0 : index
    %c0_96 = arith.constant 0 : index
    %92 = vector.load %arg7[%c0_95, %c0_96] : memref<8x8xbf16, #tpu.memory_space<vmem>>, vector<8x8xbf16>
    %cst_97 = arith.constant dense<0.000000e+00> : vector<64x8xf32>
    %93 = tpu.matmul %91, %92, %cst_97 {dimension_numbers = #tpu.dot_dimension_numbers<[1], [0], [0], [1], [0, 0, 1, 1], [], []>} : vector<64x8xbf16>, vector<8x8xbf16>, vector<64x8xf32> -> vector<64x8xf32>
    %c0_98 = arith.constant 0 : index
    %c0_99 = arith.constant 0 : index
    %94 = vector.load %arg8[%c0_98, %c0_99] : memref<1x8xf32, #tpu.memory_space<vmem>>, vector<1x8xf32>
    %95 = vector.broadcast %94 : vector<1x8xf32> to vector<64x8xf32>
    %96 = arith.addf %93, %95 : vector<64x8xf32>
    %97 = math.rsqrt %96 : vector<64x8xf32>
    %98 = arith.mulf %85, %97 : vector<64x8xf32>
    %99 = arith.addf %98, %89 : vector<64x8xf32>
    %100 = vector.shape_cast %99 : vector<64x8xf32> to vector<8x8x8xf32>
    %c0_100 = arith.constant 0 : index
    %c0_101 = arith.constant 0 : index
    %c0_102 = arith.constant 0 : index
    %c0_103 = arith.constant 0 : index
    %101 = vector.load %arg10[%c0_100, %c0_101, %c0_102, %c0_103] : memref<1x8x8x8xf32, #tpu.memory_space<vmem>>, vector<1x8x8x8xf32>
    %102 = vector.shape_cast %101 : vector<1x8x8x8xf32> to vector<8x8x8xf32>
    %103 = vector.shape_cast %100 : vector<8x8x8xf32> to vector<1x8x8x8xf32>
    tpu.vector_store %arg10[%c0_100, %c0_101, %c0_102, %c0_103], %103 {strides = array<i32>} : memref<1x8x8x8xf32, #tpu.memory_space<vmem>>, vector<1x8x8x8xf32>,
    return
  }
  func.func @transform_0(%arg0: i32, %arg1: i32) -> (i32, i32, i32, i32, i32) {
    %c0_i32 = arith.constant 0 : i32
    %c0_i32_0 = arith.constant 0 : i32
    %c0_i32_1 = arith.constant 0 : i32
    %c0_i32_2 = arith.constant 0 : i32
    return %arg0, %arg1, %c0_i32, %c0_i32_0, %c0_i32_1 : i32, i32, i32, i32, i32
  }
  func.func @transform_1(%arg0: i32, %arg1: i32) -> (i32, i32) {
    %c0_i32 = arith.constant 0 : i32
    %c0_i32_0 = arith.constant 0 : i32
    %c0_i32_1 = arith.constant 0 : i32
    return %c0_i32, %c0_i32_0 : i32, i32
  }
  func.func @transform_2(%arg0: i32, %arg1: i32) -> (i32, i32) {
    %c0_i32 = arith.constant 0 : i32
    %c0_i32_0 = arith.constant 0 : i32
    %c0_i32_1 = arith.constant 0 : i32
    return %c0_i32, %c0_i32_0 : i32, i32
  }
  func.func @transform_3(%arg0: i32, %arg1: i32) -> (i32, i32) {
    %c0_i32 = arith.constant 0 : i32
    %c0_i32_0 = arith.constant 0 : i32
    %c0_i32_1 = arith.constant 0 : i32
    return %c0_i32, %c0_i32_0 : i32, i32
  }
  func.func @transform_4(%arg0: i32, %arg1: i32) -> (i32, i32) {
    %c0_i32 = arith.constant 0 : i32
    %c0_i32_0 = arith.constant 0 : i32
    %c0_i32_1 = arith.constant 0 : i32
    return %c0_i32, %c0_i32_0 : i32, i32
  }
  func.func @transform_5(%arg0: i32, %arg1: i32) -> (i32, i32) {
    %c0_i32 = arith.constant 0 : i32
    %c0_i32_0 = arith.constant 0 : i32
    %c0_i32_1 = arith.constant 0 : i32
    return %c0_i32, %c0_i32_0 : i32, i32
  }
  func.func @transform_6(%arg0: i32, %arg1: i32) -> (i32, i32) {
    %c0_i32 = arith.constant 0 : i32
    %c0_i32_0 = arith.constant 0 : i32
    %c0_i32_1 = arith.constant 0 : i32
    return %c0_i32, %c0_i32_0 : i32, i32
  }
  func.func @transform_7(%arg0: i32, %arg1: i32) -> (i32, i32) {
    %c0_i32 = arith.constant 0 : i32
    %c0_i32_0 = arith.constant 0 : i32
    %c0_i32_1 = arith.constant 0 : i32
    return %c0_i32, %c0_i32_0 : i32, i32
  }
  func.func @transform_8(%arg0: i32, %arg1: i32) -> (i32, i32, i32, i32) {
    %c0_i32 = arith.constant 0 : i32
    %c0_i32_0 = arith.constant 0 : i32
    %c0_i32_1 = arith.constant 0 : i32
    return %arg0, %arg1, %c0_i32, %c0_i32_0 : i32, i32, i32, i32
  }
}

</mosaic_0001>

<bundles_post_ra>
// kernel: residual_block_with_stride_slim.1
= control target key start
LH: loop header
LB: loop body
LE: loop exit
PB: predicated region body
PF: predicated region fallthrough
CT: control target
= control target key end

     0   :  { %13 = vsyncpa [#allocation4], 0  ;;  %s4163_s0 = inlined_call_operand.vmem [shape: bf16[2,1,11,9,16], index: 0, kind: input, shape index: {}]   ;;  %s4164_s1 = inlined_call_operand.vmem [shape: bf16[36,8], index: 1, kind: input, shape index: {}]   ;;  %s4165_s2 = inlined_call_operand.vmem [shape: f32[1,8], index: 2, kind: input, shape index: {}]   ;;  %s4166_s3 = inlined_call_operand.vmem [shape: bf16[76,16], index: 3, kind: input, shape index: {}]   ;;  %s4167_s4 = inlined_call_operand.vmem [shape: f32[1,8], index: 4, kind: input, shape index: {}]   ;;  %s4168_s5 = inlined_call_operand.vmem [shape: bf16[8,8], index: 5, kind: input, shape index: {}]   ;;  %s4169_s6 = inlined_call_operand.vmem [shape: f32[1,8], index: 6, kind: input, shape index: {}]   ;;  %s4170_s7 = inlined_call_operand.vmem [shape: f32[1,8], index: 7, kind: input, shape index: {}]   ;;  %s4171_s8 = inlined_call_operand.hbm [shape: f32[2,8,8,8], index: 8, kind: output, shape index: {}]  }
   0x1   :  { %15 = vsyncpa [#allocation4 + $0x1], 0  ;;  %s3138_s27 = smov 0   ;;  %s3140_s28 = smov 0  }
   0x2   :  { %s3142_s29 = smov 0   ;;  %s3144_s30 = smov 0  }
   0x3   :  { %s3146_s9 = smov 0   ;;  %s3148_s10 = smov 0  }
   0x4 LB: > { %s2626_s11 = sadd.s32 4294967295, %s3074_s10   ;;  %s2627_s12 = sadd.s32 4294967294, %s3074_s10   ;;  %s3074_s10 = sphi %s3148_s10, %s21_s10   ;;  %s3070_s9 = sphi %s3146_s9, %s4188_s9   ;;  %s3066_s30 = sphi %s3144_s30, %s4187_s30   ;;  %s3062_s29 = sphi %s3142_s29, %s4186_s29   ;;  %s3058_s28 = sphi %s3140_s28, %s4185_s28   ;;  %s3054_s27 = sphi %s3138_s27, %s4184_s27  }
   0x5   : > { %s33_s13 = sadd.s32 1, %s3070_s9  ;;  %s217_s14 = sadd.s32 1, %s3062_s29 }
   0x6   : > { %p35_p0 = scmp.ge.s32.totalorder %s33_s13, 2  ;;  %p227_p1 = scmp.ne.s32.totalorder %s3062_s29, %s3058_s28 }
   0x7   : > { %p228_p2 = scmp.eq.s32.totalorder %s2626_s11, 1  ;;  %p233_p3 = scmp.ne.s32.totalorder %s3058_s28, %s3054_s27 }
   0x8   : > { %s4190_s13 = smov (%p35_p0, %s33_s13), 0  ;;  %p234_p5 = scmp.eq.s32.totalorder %s2627_s12, 1 }
   0x9   : > { %p3178_p4 = por %p228_p2, %p227_p1  ;;  %s212_s16 = ssub.s32 %s3070_s9, %s4190_s13 }
   0xa   : > { %p2630_p6 = scmp.ge.s32.totalorder %s3074_s10, 1  ;;  %p215_p7 = scmp.eq.s32.totalorder %s212_s16, 0 }
   0xb   : > { %p3185_p8 = por %p234_p5, %p233_p3  ;;  %p285_p9 = scmp.lt.s32.totalorder %s3074_s10, 3 }
   0xc   : > { %s3191_s18 = scalar_select %p215_p7, %s3062_s29, %s217_s14  }
   0xd   : > { %p286_p10 = pnand %p2630_p6, %p285_p9 }
   0xe   : > { %p323_p11 = scmp.lt.s32.totalorder (!%p286_p10), %s3066_s30, 1  ;;  %v2954_v0 = vld [vmem:[%s4164_s1] sm:$0xff] (!%p286_p10)   ;;  %v3076_v1 = vmov (!%p286_p10), 0.0   ;;  %vm354_vm0 = vsmask.f32 (!%p286_p10), 3328  ;;  %s3077_s26 = smov (!%p286_p10), 4  }
   0xf   : > { %289 = sbr.rel (%p286_p10) target bundleno = 1099 (0x44b), region = 52  ;;  %2816 = vmatprep.subr.bf16.mxu0 (!%p286_p10), %v3076_v1  ;;  %vm355_vm1 = vsmask.f32 (!%p286_p10), 7440  ;;  %s3078_s11 = smov (!%p286_p10), 24   ;;  %v2955_v29 = vld [vmem:[%s4164_s1 + $0x8] sm:$0xff] (!%p286_p10)   ;;  %vm898_vm3 = vcmask (!%p286_p10), 1041408  }
  0x10   : > { %2817 = vmatpush3.bf16.msra.mxu0 (!%p286_p10), %v2954_v0  ;;  %vm3233_vm2 = vmor (!%p286_p10), %vm354_vm0, %vm355_vm1  ;;  %s3079_s16 = smov (!%p286_p10), 12   ;;  %vm3082_vm4 = vmmov (!%p286_p10), 0   ;;  %vm793_vm5 = vcmask (!%p286_p10), 64512   ;;  %vm804_vm6 = vcmask (!%p286_p10), 97280   ;;  %vm815_vm7 = vcmask (!%p286_p10), 130048   ;;  %s3084_s23 = smov (!%p286_p10), 60  }
  0x11   : > { %2818 = vmatprep.subr.bf16.mxu0 (!%p286_p10), %v3076_v1  ;;  %2822 = vmatprep.mubr.msk.bf16.mxu0 (!%p286_p10), %vm3082_vm4, %v3076_v1  ;;  %vm821_vm8 = vcmask (!%p286_p10), 162816   ;;  %vm832_vm9 = vcmask (!%p286_p10), 195584   ;;  %vm843_vm10 = vcmask (!%p286_p10), 228352   ;;  %vm849_vm11 = vcmask (!%p286_p10), 261120   ;;  %s3085_s12 = smov (!%p286_p10), 16   ;;  %s3086_s14 = smov (!%p286_p10), 48  }
  0x12   : > { %vm887_vm12 = vcmask (!%p286_p10), 293888   ;;  %vm1217_vm13 = vcmask (!%p286_p10), 60416   ;;  %vm1218_vm14 = vsmask.f32 (!%p286_p10), 7938  ;;  %vm1223_vm15 = vcmask (!%p286_p10), 57344   ;;  %s3087_s21 = smov (!%p286_p10), 40  }
  0x13   : > { %vm1224_vm0 = vsmask.f32 (!%p286_p10), 256  ;;  %vm3440_vm1 = vmand (!%p286_p10), %vm1217_vm13, %vm1218_vm14  ;;  %vm1497_vm13 = vcmask (!%p286_p10), 1046532   ;;  %s3088_s22 = smov (!%p286_p10), 64   ;;  %v2774_v51 = vld [vmem:[%s4170_s7] ss:$0 sm:$0xff] (!%p286_p10) }
  0x14   : > { %2819 = vmatpush3.bf16.msra.mxu0 (!%p286_p10), %v2955_v29  ;;  %s3090_s24 = smov (!%p286_p10), 120  }
  0x15   : > { %2820 = vmatprep.subr.bf16.mxu0 (!%p286_p10), %v3076_v1 }
  0x16   : > { %s324_s19 = scalar_select %p323_p11, %s3066_s30, 1 }
  0x18   : > { %s2872_s20 = smul.u32 88, %s324_s19  ;;  %s3080_s19 = smov 8  }
  0x1a   : > { %s3202_s25 = scalar_lea.vmem %s4163_s0, %s2872_s20  ;;  %s3081_s20 = smov 32  }
  0x1b   : > { %v334_v2 = vld [vmem:[%s3202_s25] sm:$0xf]  ;;  %v335_v3 = vld [vmem:[%s3202_s25 + $0x8] sm:$0xf]  ;;  %v2634_v9 = vld [vmem:[%s3202_s25 + $0x10] sm:$0xf] }
  0x1c   : > { %v2633_v4 = vld [vmem:[%s3202_s25 + $0x8] sm:$0xf]  ;;  %v372_v5 = vshrl.u32 %v335_v3, 16  ;;  %v375_v6 = vshll.u32 %v335_v3, 16  ;;  %v3208_v7 = vcombine.low %v334_v2, %v335_v3  ;;  %v358_v8 = vshrl.u32 %v334_v2, 16 }
  0x1d   : > { %v361_v10 = vshll.u32 %v334_v2, 16  ;;  %v533_v11 = vshrl.u32 %v2634_v9, 16  ;;  %v536_v12 = vshll.u32 %v2634_v9, 16  ;;  %v2663_v13 = vcombine.low %v2633_v4, %v2634_v9  ;;  %v336_v14 = vld [vmem:[%s3202_s25 + $0x10] sm:$0xf] }
  0x1e   : > { %v374_v15 = vrot.slane %v372_v5, 4  ;;  %v377_v16 = vrot.slane %v375_v6, 5  ;;  %708 = vrot.lane.b32.xlu0 %v3208_v7, %s3077_s26  ;;  %v360_v17 = vrot.slane %v358_v8, 4  ;;  %v519_v18 = vshrl.u32 %v2633_v4, 16  ;;  %v337_v19 = vld [vmem:[%s3202_s25 + $0x18] sm:$0xf] }
  0x1f   : > { %v363_v20 = vrot.slane %v361_v10, 5  ;;  %v535_v21 = vrot.slane %v533_v11, 4  ;;  %v538_v22 = vrot.slane %v536_v12, 5  ;;  %753 = vrot.lane.b32.xlu1 %v2663_v13, %s3078_s11  ;;  %v522_v23 = vshll.u32 %v2633_v4, 16  ;;  %v344_v28 = vld [vmem:[%s3202_s25 + $0x4] sm:$0x1] }
  0x20   : > { %v378_v24 = vor.u32 %v377_v16, %v374_v15  ;;  %v521_v25 = vrot.slane %v519_v18, 4  ;;  %v386_v26 = vshrl.u32 %v336_v14, 16  ;;  %v389_v27 = vshll.u32 %v336_v14, 16  ;;  %v345_v34 = vld [vmem:[%s3202_s25 + $0xc] sm:$0x1] }
  0x21   : > { %v364_v30 = vor.u32 %v363_v20, %v360_v17  ;;  %v539_v31 = vor.u32 %v538_v22, %v535_v21  ;;  %v524_v32 = vrot.slane %v522_v23, 5  ;;  %v400_v33 = vshrl.u32 %v337_v19, 16  ;;  %v346_v35 = vld [vmem:[%s3202_s25 + $0x14] sm:$0x1]  ;;  %v347_v40 = vld [vmem:[%s3202_s25 + $0x1c] sm:$0x1] }
  0x22   : > { %v379_v36 = vrot.slane %v378_v24, 4  ;;  %v388_v37 = vrot.slane %v386_v26, 4  ;;  %v391_v38 = vrot.slane %v389_v27, 5  ;;  %v403_v39 = vshll.u32 %v337_v19, 16  ;;  %v2635_v45 = vld [vmem:[%s3202_s25 + $0x18] sm:$0xf] }
  0x23   : > { %v365_v41 = vrot.slane %v364_v30, 4  ;;  %v3223_v42 = vrot.slane %v539_v31, 4  ;;  %v525_v43 = vor.u32 %v524_v32, %v521_v25  ;;  %v402_v44 = vrot.slane %v400_v33, 4  ;;  %v2636_v58 = vld [vmem:[%s3202_s25 + $0x20] sm:$0xf] }
  0x24   : > { %v405_v46 = vrot.slane %v403_v39, 5  ;;  %v3227_v47 = vcombine.low %v336_v14, %v337_v19  ;;  %v367_v48 = vshll.u32 %v344_v28, 16  ;;  %v381_v49 = vshll.u32 %v345_v34, 16  ;;  %v2643_v0 = vld [vmem:[%s3202_s25 + $0xc] sm:$0x1] }
  0x25   : > { %v3229_v50 = vrot.slane %v525_v43, 4  ;;  %v392_v52 = vor.u32 %v391_v38, %v388_v37  ;;  %v395_v53 = vshll.u32 %v346_v35, 16  ;;  %v409_v54 = vshll.u32 %v347_v40, 16  ;;  %v2644_v6 = vld [vmem:[%s3202_s25 + $0x14] sm:$0x1] }
  0x26   : > { %710 = vrot.lane.b32.xlu0 %v3227_v47, %s3077_s26  ;;  %v369_v55 = vrot.slane %v367_v48, 5  ;;  %v383_v56 = vrot.slane %v381_v49, 5  ;;  %v406_v57 = vor.u32 %v405_v46, %v402_v44  ;;  %v547_v59 = vshrl.u32 %v2635_v45, 16  ;;  %v2645_v12 = vld [vmem:[%s3202_s25 + $0x1c] sm:$0x1] }
  0x27   : > { %v393_v60 = vrot.slane %v392_v52, 4  ;;  %v397_v61 = vrot.slane %v395_v53, 5  ;;  %v411_v62 = vrot.slane %v409_v54, 5  ;;  %v550_v63 = vshll.u32 %v2635_v45, 16  ;;  %v2646_v13 = vld [vmem:[%s3202_s25 + $0x24] sm:$0x1] }
  0x28   : > { %v370_v2 = vsel %vm3233_vm2, %v365_v41, %v369_v55  ;;  %v384_v3 = vsel %vm3233_vm2, %v379_v36, %v383_v56  ;;  %v407_v4 = vrot.slane %v406_v57, 4  ;;  %v549_v5 = vrot.slane %v547_v59, 4  ;;  %v338_v18 = vld [vmem:[%s3202_s25 + $0x20] sm:$0xf]  ;;  %v348_v27 = vld [vmem:[%s3202_s25 + $0x24] sm:$0x1] }
  0x29   : > { %v2658_v8 = vcombine.low %v370_v2, %v384_v3  ;;  %v398_v9 = vsel %vm3233_vm2, %v393_v60, %v397_v61  ;;  %v552_v10 = vrot.slane %v550_v63, 5  ;;  %v561_v11 = vshrl.u32 %v2636_v58, 16  ;;  %v339_v30 = vld [vmem:[%s3202_s25 + $0x28] sm:$0xf]  ;;  %v349_v37 = vld [vmem:[%s3202_s25 + $0x2c] sm:$0x1] }
  0x2a   : > { %v412_v14 = vsel %vm3233_vm2, %v407_v4, %v411_v62  ;;  %v564_v15 = vshll.u32 %v2636_v58, 16  ;;  %v2664_v16 = vcombine.low %v2635_v45, %v2636_v58  ;;  %v528_v17 = vshll.u32 %v2643_v0, 16  ;;  %v3267_v43 = vld [vmem:[%s3202_s25 + $0x28] sm:$0xf]  ;;  %v3272_v54 = vld [vmem:[%s3202_s25 + $0x30] sm:$0xf] }
  0x2b   : > { %718 = vrot.lane.b32.xlu1 %v2658_v8, %s3079_s16  ;;  %698 = vrot.lane.b32.xlu0 %v2658_v8, %s3080_s19  ;;  %v2659_v19 = vcombine.low %v398_v9, %v412_v14  ;;  %v563_v20 = vrot.slane %v561_v11, 4  ;;  %v542_v21 = vshll.u32 %v2644_v6, 16  ;;  %v553_v22 = vor.u32 %v552_v10, %v549_v5  ;;  %v2647_v58 = vld [vmem:[%s3202_s25 + $0x2c] sm:$0x1]  ;;  %v2648_v63 = vld [vmem:[%s3202_s25 + $0x34] sm:$0x1] }
  0x2c   : > { %v566_v23 = vrot.slane %v564_v15, 5  ;;  %v530_v24 = vrot.slane %v528_v17, 5  ;;  %v556_v25 = vshll.u32 %v2645_v12, 16  ;;  %v570_v26 = vshll.u32 %v2646_v13, 16  ;;  %v3287_v5 = vld [vmem:[%s3202_s25 + $0x30] sm:$0xf] }
  0x2d   : > { %v544_v28 = vrot.slane %v542_v21, 5  ;;  %v554_v29 = vrot.slane %v553_v22, 4  ;;  %v414_v31 = vshrl.u32 %v338_v18, 16  ;;  %v417_v32 = vshll.u32 %v338_v18, 16  ;;  %v350_v11 = vld [vmem:[%s3202_s25 + $0x34] sm:$0x1] }
  0x2e   : > { %v531_v33 = vsel %vm3233_vm2, %v3229_v50, %v530_v24  ;;  %v558_v34 = vrot.slane %v556_v25, 5  ;;  %v567_v35 = vor.u32 %v566_v23, %v563_v20  ;;  %v572_v36 = vrot.slane %v570_v26, 5  ;;  %v351_v24 = vld [vmem:[%s3202_s25 + $0x3c] sm:$0x1]  ;;  %v3302_v26 = vld [vmem:[%s3202_s25 + $0x38] sm:$0xf] }
  0x2f   : > { %700 = vrot.lane.b32.xlu1 %v2659_v19, %s3080_s19  ;;  %755 = vrot.lane.b32.xlu0 %v2664_v16, %s3078_s11  ;;  %v545_v38 = vsel %vm3233_vm2, %v3223_v42, %v544_v28  ;;  %v416_v39 = vrot.slane %v414_v31, 4  ;;  %v419_v40 = vrot.slane %v417_v32, 5  ;;  %v423_v41 = vshll.u32 %v348_v27, 16  ;;  %v3295_v16 = vld [vmem:[%s3202_s25 + $0x38] sm:$0xf] }
  0x30   : > { %v2668_v44 = vcombine.low %v531_v33, %v545_v38  ;;  %v559_v45 = vsel %vm3233_vm2, %v554_v29, %v558_v34  ;;  %v568_v46 = vrot.slane %v567_v35, 4  ;;  %v428_v48 = vshrl.u32 %v339_v30, 16  ;;  %v3308_v31 = vld [vmem:[%s3202_s25 + $0x40] sm:$0xf] }
  0x31   : > { %v420_v49 = vor.u32 %v419_v40, %v416_v39  ;;  %v425_v50 = vrot.slane %v423_v41, 5  ;;  %v431_v52 = vshll.u32 %v339_v30, 16  ;;  %v437_v53 = vshll.u32 %v349_v37, 16  ;;  %v2650_v41 = vld [vmem:[%s3202_s25 + $0x44] sm:$0x1] }
  0x32   : > { %v573_v42 = vsel %vm3233_vm2, %v568_v46, %v572_v36  ;;  %v430_v55 = vrot.slane %v428_v48, 4  ;;  %v3276_v56 = vcombine.low %v338_v18, %v339_v30  ;;  %v575_v57 = vshrl.u32 %v3267_v43, 16  ;;  %v2649_v36 = vld [vmem:[%s3202_s25 + $0x3c] sm:$0x1]  ;;  %v3322_v46 = vld [vmem:[%s3202_s25 + $0x40] sm:$0xf] }
  0x33   : > { %720 = vrot.lane.b32.xlu1 %v2659_v19, %s3079_s16  ;;  %778 = vrot.lane.b32.xlu0 %v2668_v44, %s3081_s20  ;;  %v2669_v59 = vcombine.low %v559_v45, %v573_v42  ;;  %v421_v60 = vrot.slane %v420_v49, 4  ;;  %v433_v61 = vrot.slane %v431_v52, 5  ;;  %v439_v62 = vrot.slane %v437_v53, 5  ;;  %v352_v52 = vld [vmem:[%s3202_s25 + $0x44] sm:$0x1] }
  0x34   : > { %v577_v0 = vrot.slane %v575_v57, 4  ;;  %v578_v2 = vshll.u32 %v3267_v43, 16  ;;  %v589_v3 = vshrl.u32 %v3272_v54, 16  ;;  %v592_v4 = vshll.u32 %v3272_v54, 16  ;;  %v3329_v57 = vld [vmem:[%s3202_s25 + $0x48] sm:$0xf] }
  0x35   : > { %v426_v6 = vsel %vm3233_vm2, %v421_v60, %v425_v50  ;;  %v434_v8 = vor.u32 %v433_v61, %v430_v55  ;;  %v2665_v9 = vcombine.low %v3267_v43, %v3272_v54  ;;  %v584_v10 = vshll.u32 %v2647_v58, 16 }
  0x36   : > { %v580_v12 = vrot.slane %v578_v2, 5  ;;  %v591_v13 = vrot.slane %v589_v3, 4  ;;  %v594_v14 = vrot.slane %v592_v4, 5  ;;  %v598_v15 = vshll.u32 %v2648_v63, 16 }
  0x37   : > { %780 = vrot.lane.b32.xlu1 %v2669_v59, %s3081_s20  ;;  %v435_v17 = vrot.slane %v434_v8, 4  ;;  %v586_v18 = vrot.slane %v584_v10, 5  ;;  %v442_v19 = vshrl.u32 %v3287_v5, 16  ;;  %v445_v20 = vshll.u32 %v3287_v5, 16 }
  0x38   : > { %v581_v21 = vor.u32 %v580_v12, %v577_v0  ;;  %v595_v22 = vor.u32 %v594_v14, %v591_v13  ;;  %v600_v23 = vrot.slane %v598_v15, 5  ;;  %v451_v25 = vshll.u32 %v350_v11, 16  ;;  %v353_v12 = vld [vmem:[%s3202_s25 + $0x4c] sm:$0x1] }
  0x39   : > { %v440_v27 = vsel %vm3233_vm2, %v435_v17, %v439_v62  ;;  %v444_v28 = vrot.slane %v442_v19, 4  ;;  %v447_v29 = vrot.slane %v445_v20, 5  ;;  %v456_v30 = vshrl.u32 %v3295_v16, 16  ;;  %v2641_v19 = vld [vmem:[%s3202_s25 + $0x48] sm:$0xf] }
  0x3a   : > { %v2660_v32 = vcombine.low %v426_v6, %v440_v27  ;;  %v582_v33 = vrot.slane %v581_v21, 4  ;;  %v596_v34 = vrot.slane %v595_v22, 4  ;;  %v453_v35 = vrot.slane %v451_v25, 5 }
  0x3b   : > { %712 = vrot.lane.b32.xlu1 %v3276_v56, %s3077_s26  ;;  %v448_v37 = vor.u32 %v447_v29, %v444_v28  ;;  %v458_v38 = vrot.slane %v456_v30, 4  ;;  %v459_v39 = vshll.u32 %v3295_v16, 16  ;;  %v465_v40 = vshll.u32 %v351_v24, 16  ;;  %v2642_v29 = vld [vmem:[%s3202_s25 + $0x50] sm:$0xf] }
  0x3c   : > { %702 = vrot.lane.b32.xlu0 %v2660_v32, %s3080_s19  ;;  %v587_v43 = vsel %vm3233_vm2, %v582_v33, %v586_v18  ;;  %v601_v44 = vsel %vm3233_vm2, %v596_v34, %v600_v23  ;;  %v603_v45 = vshrl.u32 %v3302_v26, 16  ;;  %v606_v54 = vshll.u32 %v3302_v26, 16 }
  0x3d   : > { %v2670_v48 = vcombine.low %v587_v43, %v601_v44  ;;  %v449_v49 = vrot.slane %v448_v37, 4  ;;  %v461_v50 = vrot.slane %v459_v39, 5  ;;  %v617_v42 = vshrl.u32 %v3308_v31, 16  ;;  %v2652_v37 = vld [vmem:[%s3202_s25 + $0x54] sm:$0x1] }
  0x3e   : > { %v605_v53 = vrot.slane %v603_v45, 4  ;;  %v620_v55 = vshll.u32 %v3308_v31, 16  ;;  %v467_v60 = vrot.slane %v465_v40, 5  ;;  %v612_v61 = vshll.u32 %v2649_v36, 16 }
  0x3f   : > { %757 = vrot.lane.b32.xlu1 %v2665_v9, %s3078_s11  ;;  %v454_v58 = vsel %vm3233_vm2, %v449_v49, %v453_v35  ;;  %v462_v59 = vor.u32 %v461_v50, %v458_v38  ;;  %v608_v62 = vrot.slane %v606_v54, 5  ;;  %v619_v63 = vrot.slane %v617_v42, 4  ;;  %v2956_v49 = vld [vmem:[%s4164_s1 + $0x10] ss:$0 sps:$4 sm:$0x33]  }
  0x40   : > { %722 = vrot.lane.b32.xlu0 %v2660_v32, %s3079_s16  ;;  %v622_v0 = vrot.slane %v620_v55, 5  ;;  %v626_v2 = vshll.u32 %v2650_v41, 16  ;;  %v614_v4 = vrot.slane %v612_v61, 5  ;;  %v470_v6 = vshrl.u32 %v3322_v46, 16 }
  0x41   : > { %v463_v3 = vrot.slane %v462_v59, 4  ;;  %v473_v8 = vshll.u32 %v3322_v46, 16  ;;  %v609_v9 = vor.u32 %v608_v62, %v605_v53  ;;  %v479_v13 = vshll.u32 %v352_v52, 16 }
  0x42   : > { %v623_v10 = vor.u32 %v622_v0, %v619_v63  ;;  %v628_v11 = vrot.slane %v626_v2, 5  ;;  %v472_v15 = vrot.slane %v470_v6, 4  ;;  %v484_v18 = vshrl.u32 %v3329_v57, 16 }
  0x43   : > { %v468_v14 = vsel %vm3233_vm2, %v463_v3, %v467_v60  ;;  %v475_v17 = vrot.slane %v473_v8, 5  ;;  %v3345_v21 = vcombine.low %v3287_v5, %v3295_v16  ;;  %v610_v22 = vrot.slane %v609_v9, 4  ;;  %v2651_v5 = vld [vmem:[%s3202_s25 + $0x4c] sm:$0x1] }
  0x44   : > { %782 = vrot.lane.b32.xlu0 %v2670_v48, %s3081_s20  ;;  %v2661_v20 = vcombine.low %v454_v58, %v468_v14  ;;  %v624_v23 = vrot.slane %v623_v10, 4  ;;  %v486_v25 = vrot.slane %v484_v18, 4  ;;  %v487_v27 = vshll.u32 %v3329_v57, 16 }
  0x45   : > { %v476_v24 = vor.u32 %v475_v17, %v472_v15  ;;  %v493_v28 = vshll.u32 %v353_v12, 16  ;;  %v615_v30 = vsel %vm3233_vm2, %v610_v22, %v614_v4  ;;  %v631_v33 = vshrl.u32 %v2641_v19, 16 }
  0x46   : > { %704 = vrot.lane.b32.xlu1 %v2661_v20, %s3080_s19  ;;  %v629_v32 = vsel %vm3233_vm2, %v624_v23, %v628_v11  ;;  %v2666_v16 = vcombine.low %v3302_v26, %v3308_v31  ;;  %v481_v35 = vrot.slane %v479_v13, 5  ;;  %v489_v36 = vrot.slane %v487_v27, 5 }
  0x47   : > { %v477_v34 = vrot.slane %v476_v24, 4  ;;  %v633_v38 = vrot.slane %v631_v33, 4  ;;  %v634_v39 = vshll.u32 %v2641_v19, 16  ;;  %v645_v40 = vshrl.u32 %v2642_v29, 16 }
  0x48   : > { %714 = vrot.lane.b32.xlu0 %v3345_v21, %s3077_s26  ;;  %v648_v41 = vshll.u32 %v2642_v29, 16  ;;  %v2671_v43 = vcombine.low %v615_v30, %v629_v32  ;;  %v490_v44 = vor.u32 %v489_v36, %v486_v25  ;;  %v495_v45 = vrot.slane %v493_v28, 5 }
  0x49   : > { %v640_v48 = vshll.u32 %v2651_v5, 16  ;;  %v636_v26 = vrot.slane %v634_v39, 5  ;;  %v647_v31 = vrot.slane %v645_v40, 4  ;;  %v654_v52 = vshll.u32 %v2652_v37, 16 }
  0x4a   : > { %724 = vrot.lane.b32.xlu1 %v2661_v20, %s3079_s16  ;;  %v650_v50 = vrot.slane %v648_v41, 5  ;;  %v482_v53 = vsel %vm3233_vm2, %v477_v34, %v481_v35  ;;  %v491_v54 = vrot.slane %v490_v44, 4  ;;  %v3369_v42 = vcombine.low %v3322_v46, %v3329_v57 }
  0x4b   : > { %v637_v55 = vor.u32 %v636_v26, %v633_v38  ;;  %v642_v60 = vrot.slane %v640_v48, 5  ;;  %v656_v61 = vrot.slane %v654_v52, 5  ;;  %v900_v2 = vsel %vm898_vm3, %v2956_v49, 0  ;;  %vm3445_vm3 = vmand %vm1223_vm15, %vm1224_vm0 }
  0x4c   : > { %759 = vrot.lane.b32.xlu0 %v2666_v16, %s3078_s11  ;;  %v651_v58 = vor.u32 %v650_v50, %v647_v31  ;;  %v496_v59 = vsel %vm3233_vm2, %v491_v54, %v495_v45  ;;  %2821 = vmatpush3.bf16.msra.mxu0 %v900_v2  ;;  %v2667_v3 = vcombine.low %v2641_v19, %v2642_v29 }
  0x4d   : > { %v2662_v62 = vcombine.low %v482_v53, %v496_v59  ;;  %v638_v63 = vrot.slane %v637_v55, 4 }
  0x4e   : > { %784 = vrot.lane.b32.xlu1 %v2671_v43, %s3081_s20  ;;  %v652_v0 = vrot.slane %v651_v58, 4 }
  0x4f   : > { %v643_v46 = vsel %vm3233_vm2, %v638_v63, %v642_v60 }
  0x50   : > { %706 = vrot.lane.b32.xlu0 %v2662_v62, %s3080_s19  ;;  %v657_v57 = vsel %vm3233_vm2, %v652_v0, %v656_v61 }
  0x51   : > { %v2672_v4 = vcombine.low %v643_v46, %v657_v57 }
  0x52   : > { %716 = vrot.lane.b32.xlu1 %v3369_v42, %s3077_s26  ;;  %s3091_s26 = smov [#allocation3]  }
  0x54   : > { %726 = vrot.lane.b32.xlu0 %v2662_v62, %s3079_s16  ;;  %s3089_s16 = smov 56  }
  0x56   : > { %761 = vrot.lane.b32.xlu1 %v2667_v3, %s3078_s11 }
  0x58   : > { %786 = vrot.lane.b32.xlu0 %v2672_v4, %s3081_s20 }
  0x90   : > { %v709_v6 = vpop.permute.xlu0 %708 }
  0x91   : > { %v754_v8 = vpop.permute.xlu1 %753 }
  0x98   : > { %v711_v9 = vpop.permute.xlu0 %710 }
  0x9d   : > { %v719_v10 = vpop.permute.xlu1 %718  ;;  %v699_v11 = vpop.permute.xlu0 %698 }
  0x9e   : > { %v795_v12 = vsel %vm793_vm5, %v3208_v7, %v699_v11 }
  0x9f   : > { %v806_v13 = vsel %vm804_vm6, %v795_v12, %v709_v6 }
  0xa0   : > { %v816_v14 = vsel %vm815_vm7, %v806_v13, %v709_v6  ;;  %v1220_v13 = vld [vmem:[#allocation2] sm:$0xf] }
  0xa1   : > { %v701_v15 = vpop.permute.xlu1 %700  ;;  %v756_v17 = vpop.permute.xlu0 %755  ;;  %v823_v18 = vsel %vm821_vm8, %v816_v14, %v719_v10  ;;  %v1226_v14 = vld [vmem:[#allocation2 + $0x4] sm:$0x1] }
  0xa2   : > { %v797_v19 = vsel %vm793_vm5, %v3227_v47, %v701_v15  ;;  %v834_v20 = vsel %vm832_vm9, %v823_v18, %v754_v8 }
  0xa3   : > { %v808_v22 = vsel %vm804_vm6, %v797_v19, %v711_v9  ;;  %v844_v24 = vsel %vm843_vm10, %v834_v20, %v754_v8 }
  0xa4   : > { %v817_v7 = vsel %vm815_vm7, %v808_v22, %v711_v9 }
  0xa5   : > { %v721_v23 = vpop.permute.xlu1 %720  ;;  %v779_v25 = vpop.permute.xlu0 %778 }
  0xa6   : > { %v825_v27 = vsel %vm821_vm8, %v817_v7, %v721_v23  ;;  %v851_v28 = vsel %vm849_vm11, %v844_v24, %v779_v25  ;;  %v2957_v23 = vld [vmem:[%s3202_s25 + $0x18] ss:$8 sps:$4 sm:$0xff]   ;;  %v2958_v24 = vld [vmem:[%s3202_s25 + $0x8] ss:$8 sps:$4 sm:$0xff]  }
  0xa7   : > { %2823 = vmatmul.mubr.msk.bf16.vlgmr.msra.gmra.mrb[0].mxu0 %vm887_vm12, %v851_v28  ;;  %v836_v47 = vsel %vm832_vm9, %v825_v27, %v756_v17  ;;  %2127 = vrot.lane.b32.xlu1 %v2957_v23, %s3084_s23  ;;  %v1277_v25 = vld [vmem:[#allocation2 + $0x48] sm:$0xf]  ;;  %v1280_v27 = vld [vmem:[#allocation2 + $0x4c] sm:$0x1] }
  0xa8   : > { %2826 = vmatprep.mubr.msk.bf16.mxu0 %vm3082_vm4, %v3076_v1  ;;  %v845_v30 = vsel %vm843_vm10, %v836_v47, %v756_v17  ;;  %2125 = vrot.lane.b32.xlu0 %v2958_v24, %s3084_s23 }
  0xa9   : > { %v781_v29 = vpop.permute.xlu1 %780 }
  0xaa   : > { %v853_v33 = vsel %vm849_vm11, %v845_v30, %v781_v29 }
  0xad   : > { %v713_v32 = vpop.permute.xlu1 %712 }
  0xae   : > { %v703_v5 = vpop.permute.xlu0 %702 }
  0xaf   : > { %v799_v16 = vsel %vm793_vm5, %v3276_v56, %v703_v5  ;;  %2827 = vmatmul.mubr.msk.bf16.gmra.mrb[4].mxu0 %vm887_vm12, %v853_v33 }
  0xb0   : > { %v810_v34 = vsel %vm804_vm6, %v799_v16, %v713_v32  ;;  %2830 = vmatprep.mubr.msk.bf16.mxu0 %vm3082_vm4, %v3076_v1  ;;  %v3478_v16 = vld [vmem:[%s4165_s2] ss:$0 sm:$0xff] }
  0xb1   : > { %v818_v35 = vsel %vm815_vm7, %v810_v34, %v713_v32  ;;  %v758_v36 = vpop.permute.xlu1 %757 }
  0xb2   : > { %v723_v37 = vpop.permute.xlu0 %722 }
  0xb3   : > { %v827_v38 = vsel %vm821_vm8, %v818_v35, %v723_v37 }
  0xb4   : > { %v838_v39 = vsel %vm832_vm9, %v827_v38, %v758_v36 }
  0xb5   : > { %v846_v40 = vsel %vm843_vm10, %v838_v39, %v758_v36 }
  0xb6   : > { %v783_v41 = vpop.permute.xlu0 %782 }
  0xb7   : > { %v855_v56 = vsel %vm849_vm11, %v846_v40, %v783_v41 }
  0xb8   : > { %v705_v43 = vpop.permute.xlu1 %704  ;;  %2831 = vmatmul.mubr.msk.bf16.gmra.mrb[8].mxu0 %vm887_vm12, %v855_v56 }
  0xb9   : > { %v801_v44 = vsel %vm793_vm5, %v3345_v21, %v705_v43  ;;  %2834 = vmatprep.mubr.msk.bf16.mxu0 %vm3082_vm4, %v3076_v1 }
  0xba   : > { %v715_v45 = vpop.permute.xlu0 %714 }
  0xbb   : > { %v812_v48 = vsel %vm804_vm6, %v801_v44, %v715_v45 }
  0xbc   : > { %v819_v49 = vsel %vm815_vm7, %v812_v48, %v715_v45  ;;  %v725_v26 = vpop.permute.xlu1 %724 }
  0xbd   : > { %v829_v31 = vsel %vm821_vm8, %v819_v49, %v725_v26 }
  0xbe   : > { %v760_v50 = vpop.permute.xlu0 %759 }
  0xbf   : > { %v840_v52 = vsel %vm832_vm9, %v829_v31, %v760_v50 }
  0xc0   : > { %v847_v53 = vsel %vm843_vm10, %v840_v52, %v760_v50  ;;  %v785_v54 = vpop.permute.xlu1 %784 }
  0xc1   : > { %v857_v55 = vsel %vm849_vm11, %v847_v53, %v785_v54 }
  0xc2   : > { %2835 = vmatmul.mubr.msk.bf16.gmra.mrb[12].mxu0 %vm887_vm12, %v857_v55  ;;  %v707_v21 = vpop.permute.xlu0 %706 }
  0xc3   : > { %v803_v58 = vsel %vm793_vm5, %v3369_v42, %v707_v21  ;;  %2838 = vmatprep.mubr.msk.bf16.mxu0 %vm3082_vm4, %v3076_v1  ;;  %v3083_v42 = vmov 0.0|0.0   ;;  %vm3455_vm4 = vmand %vm1223_vm15, %vm1218_vm14 }
  0xc4   : > { %v717_v59 = vpop.permute.xlu1 %716  ;;  %v2682_v1 = vcombine.low %v3083_v42, %v3083_v42 }
  0xc5   : > { %v814_v60 = vsel %vm804_vm6, %v803_v58, %v717_v59  ;;  %v1229_v58 = vld [vmem:[#allocation2 + $0x8] sm:$0xf] }
  0xc6   : > { %v820_v61 = vsel %vm815_vm7, %v814_v60, %v717_v59  ;;  %v727_v62 = vpop.permute.xlu0 %726  ;;  %v1118_v4 = vshrl.u32 %v2682_v1, 16  ;;  %v1121_v6 = vshll.u32 %v2682_v1, 16  ;;  %v1232_v59 = vld [vmem:[#allocation2 + $0xc] sm:$0x1] }
  0xc7   : > { %v831_v63 = vsel %vm821_vm8, %v820_v61, %v727_v62 }
  0xc8   : > { %v762_v0 = vpop.permute.xlu1 %761  ;;  %v1120_v9 = vrot.slane %v1118_v4, 7 }
  0xc9   : > { %v842_v2 = vsel %vm832_vm9, %v831_v63, %v762_v0 }
  0xca   : > { %v848_v46 = vsel %vm843_vm10, %v842_v2, %v762_v0  ;;  %v787_v57 = vpop.permute.xlu0 %786  ;;  %v1123_v11 = vor.u32 %v1121_v6, %v1120_v9  ;;  %v1124_v12 = vrot.slane %v1120_v9, 4 }
  0xcb   : > { %v859_v3 = vsel %vm849_vm11, %v848_v46, %v787_v57 }
  0xcc   : > { %2839 = vmatmul.mubr.msk.bf16.gmra.mrb[16].mxu0 %vm887_vm12, %v859_v3  ;;  %v1221_v15 = vsel %vm3440_vm1, %v1123_v11, %v1220_v13  ;;  %v1227_v17 = vsel %vm3445_vm3, %v1124_v12, %v1226_v14  ;;  %v1278_v28 = vsel %vm3440_vm1, %v1123_v11, %v1277_v25  ;;  %v1281_v47 = vsel %vm3445_vm3, %v1124_v12, %v1280_v27  ;;  %v1235_v11 = vld [vmem:[#allocation2 + $0x10] sm:$0xf] }
  0xcd   : > { %1222 = vst [vmem:[#allocation2] sm:$0xf] %v1221_v15  ;;  %1228 = vst [vmem:[#allocation2 + $0x4] sm:$0x1] %v1227_v17  ;;  %vm1496_vm12 = vcmask 1042432  }
  0xce   : > { %1279 = vst [vmem:[#allocation2 + $0x48] sm:$0xf] %v1278_v28  ;;  %1282 = vst [vmem:[#allocation2 + $0x4c] sm:$0x1] %v1281_v47 }
  0xcf   : > { %vm3498_vm15 = vmor %vm1496_vm12, %vm1497_vm13  ;;  %vm2196_vm12 = vcmask 523264   ;;  %vm2205_vm13 = vcmask 588800  }
  0xd4   : > { %v1283_v19 = vld [vmem:[#allocation2] sm:$0x1]  ;;  %v1314_v20 = vld [vmem:[#allocation2 + $0x4] sm:$0x1]  ;;  %v1472_v46 = vld [vmem:[#allocation2] sm:$0xe] }
  0xd5   : > { %v1284_v22 = vsel %vm3445_vm3, 0, %v1283_v19  ;;  %v1315_v7 = vsel %vm3455_vm4, 0, %v1314_v20  ;;  %v1310_v29 = vld [vmem:[#allocation2 + $0x48] sm:$0x1]  ;;  %v1341_v30 = vld [vmem:[#allocation2 + $0x4c] sm:$0x1] }
  0xd6   : > { %1285 = vst [vmem:[#allocation2] sm:$0x1] %v1284_v22  ;;  %1316 = vst [vmem:[#allocation2 + $0x4] sm:$0x1] %v1315_v7  ;;  %v1311_v32 = vsel %vm3445_vm3, 0, %v1310_v29  ;;  %v1342_v33 = vsel %vm3455_vm4, 0, %v1341_v30 }
  0xd7   : > { %1312 = vst [vmem:[#allocation2 + $0x48] sm:$0x1] %v1311_v32  ;;  %1343 = vst [vmem:[#allocation2 + $0x4c] sm:$0x1] %v1342_v33  ;;  %v2692_v14 = vrot.slane %v1472_v46, 9 }
  0xd8   : > { %v1238_v19 = vld [vmem:[#allocation2 + $0x14] sm:$0x1] }
  0xdd   : > { %v1344_v38 = vld [vmem:[#allocation2] sm:$0xf]  ;;  %v1352_v2 = vld [vmem:[#allocation2 + $0x4] sm:$0x1] }
  0xde   : > { %v1361_v40 = vshrl.u32 %v1344_v38, 16  ;;  %v1364_v56 = vshll.u32 %v1344_v38, 16  ;;  %v1370_v42 = vshll.u32 %v1352_v2, 16  ;;  %v3487_v9 = vld [vmem:[#allocation2 + $0x48] sm:$0xf]  ;;  %v1501_v7 = vrot.slane %v1352_v2, 5 }
  0xdf   : > { %v1832_v28 = vshrl.u32 %v3487_v9, 16 }
  0xe0   : > { %v1363_v31 = vrot.slane %v1361_v40, 4  ;;  %v1366_v54 = vrot.slane %v1364_v56, 5  ;;  %v3492_v27 = vrot.slane %v1370_v42, 5  ;;  %v1241_v40 = vld [vmem:[#allocation2 + $0x18] sm:$0xf] }
  0xe2   : > { %v1367_v3 = vor.u32 %v1366_v54, %v1363_v31 }
  0xe4   : > { %v3490_v25 = vrot.slane %v1367_v3, 4 }
 0x17a   : > { %v936_v5 = vpop.f32.mrb[0].mxu0 }
 0x17b   : > { %v2824_v34 = vpop.f32.mrb[1].mxu0 }
 0x17c   : > { %v939_v35 = vpop.f32.mrb[2].mxu0 }
 0x17d   : > { %v940_v36 = vadd.f32 %v3478_v16, %v939_v35  ;;  %v2825_v37 = vpop.f32.mrb[3].mxu0 }
 0x17e   : > { %v3503_v37 = vld [vmem:[#allocation2 + $0x4c] sm:$0x1] }
 0x17f   : > { %vm976_vm6 = vcmp.gt.f32.partialorder %v940_v36, 0.0  ;;  %v986_v39 = vmul.f32 0.01, %v940_v36  ;;  %v1899_v42 = vrot.slane %v3503_v37, 5 }
 0x181   : > { %v996_v41 = vsel %vm976_vm6, %v940_v36, %v986_v39  ;;  %v1835_v36 = vshll.u32 %v3487_v9, 16 }
 0x182   : > { %v2785_v43 = vpack.c.bf16 %v996_v41, %v996_v41  ;;  %v944_v44 = vpop.f32.mrb[4].mxu0  ;;  %v1244_v41 = vld [vmem:[#allocation2 + $0x1c] sm:$0x1] }
 0x183   : > { %v945_v45 = vadd.f32 %v3478_v16, %v944_v44  ;;  %v2828_v48 = vpop.f32.mrb[5].mxu0  ;;  %v3535_v3 = vrot.slane %v1835_v36, 5 }
 0x184   : > { %v1126_v49 = vshrl.u32 %v2785_v43, 16  ;;  %v947_v26 = vpop.f32.mrb[6].mxu0  ;;  %v1129_v21 = vshll.u32 %v2785_v43, 16  ;;  %v1841_v43 = vshll.u32 %v3503_v37, 16 }
 0x185   : > { %vm977_vm8 = vcmp.gt.f32.partialorder %v945_v45, 0.0  ;;  %v987_v50 = vmul.f32 0.01, %v945_v45  ;;  %v948_v52 = vadd.f32 %v3478_v16, %v947_v26  ;;  %v2829_v53 = vpop.f32.mrb[7].mxu0 }
 0x186   : > { %v1128_v55 = vrot.slane %v1126_v49, 7  ;;  %v3510_v49 = vld [vmem:[#allocation2 + $0x48] sm:$0xe] }
 0x187   : > { %v997_v60 = vsel %vm977_vm8, %v945_v45, %v987_v50  ;;  %vm978_vm10 = vcmp.gt.f32.partialorder %v948_v52, 0.0  ;;  %v988_v61 = vmul.f32 0.01, %v948_v52 }
 0x188   : > { %v1131_v62 = vor.u32 %v1129_v21, %v1128_v55  ;;  %v1132_v63 = vrot.slane %v1128_v55, 4  ;;  %v2786_v0 = vpack.c.bf16 %v997_v60, %v997_v60 }
 0x189   : > { %v998_v57 = vsel %vm978_vm10, %v948_v52, %v988_v61  ;;  %v3514_v52 = vsel %vm3498_vm15, %v2692_v14, %v1501_v7  ;;  %v1373_v61 = vsel %vm3233_vm2, %v3490_v25, %v3492_v27 }
 0x18a   : > { %v1230_v1 = vsel %vm3440_vm1, %v1131_v62, %v1229_v58  ;;  %v1233_v4 = vsel %vm3445_vm3, %v1132_v63, %v1232_v59  ;;  %v1134_v6 = vshrl.u32 %v2786_v0, 16  ;;  %v2787_v12 = vpack.c.bf16 %v998_v57, %v998_v57 }
 0x18b   : > { %1231 = vst [vmem:[#allocation2 + $0x8] sm:$0xf] %v1230_v1  ;;  %1234 = vst [vmem:[#allocation2 + $0xc] sm:$0x1] %v1233_v4  ;;  %v952_v13 = vpop.f32.mrb[8].mxu0  ;;  %v1137_v17 = vshll.u32 %v2786_v0, 16 }
 0x18c   : > { %v1136_v15 = vrot.slane %v1134_v6, 7  ;;  %v953_v20 = vadd.f32 %v3478_v16, %v952_v13  ;;  %v2832_v22 = vpop.f32.mrb[9].mxu0  ;;  %v1142_v23 = vshrl.u32 %v2787_v12, 16  ;;  %v1145_v5 = vshll.u32 %v2787_v12, 16  ;;  %v1247_v0 = vld [vmem:[#allocation2 + $0x20] sm:$0xf] }
 0x18d   : > { %v955_v24 = vpop.f32.mrb[10].mxu0  ;;  %v2715_v63 = vrot.slane %v3510_v49, 9  ;;  %v3533_v57 = vrot.slane %v1832_v28, 4  ;;  %v1250_v6 = vld [vmem:[#allocation2 + $0x24] sm:$0x1]  ;;  %v3539_v12 = vrot.slane %v1841_v43, 5 }
 0x18e   : > { %v1139_v47 = vor.u32 %v1137_v17, %v1136_v15  ;;  %v1140_v29 = vrot.slane %v1136_v15, 4  ;;  %vm979_vm14 = vcmp.gt.f32.partialorder %v953_v20, 0.0  ;;  %v989_v30 = vmul.f32 0.01, %v953_v20  ;;  %v2833_v32 = vpop.f32.mrb[11].mxu0 }
 0x18f   : > { %v1144_v33 = vrot.slane %v1142_v23, 7  ;;  %v956_v34 = vadd.f32 %v3478_v16, %v955_v24  ;;  %v1253_v24 = vld [vmem:[#allocation2 + $0x28] sm:$0xf]  ;;  %v1256_v28 = vld [vmem:[#allocation2 + $0x2c] sm:$0x1] }
 0x190   : > { %v1236_v38 = vsel %vm3440_vm1, %v1139_v47, %v1235_v11  ;;  %v1239_v39 = vsel %vm3445_vm3, %v1140_v29, %v1238_v19  ;;  %v999_v56 = vsel %vm979_vm14, %v953_v20, %v989_v30  ;;  %vm2253_vm14 = vcmask 621568  }
 0x191   : > { %1237 = vst [vmem:[#allocation2 + $0x10] sm:$0xf] %v1236_v38  ;;  %1240 = vst [vmem:[#allocation2 + $0x14] sm:$0x1] %v1239_v39  ;;  %v1147_v44 = vor.u32 %v1145_v5, %v1144_v33  ;;  %v1148_v45 = vrot.slane %v1144_v33, 4  ;;  %v2788_v48 = vpack.c.bf16 %v999_v56, %v999_v56  ;;  %vm980_vm0 = vcmp.gt.f32.partialorder %v956_v34, 0.0 }
 0x192   : > { %v1286_v26 = vld [vmem:[#allocation2 + $0x8] sm:$0x1]  ;;  %v1317_v31 = vld [vmem:[#allocation2 + $0xc] sm:$0x1]  ;;  %v990_v50 = vmul.f32 0.01, %v956_v34 }
 0x193   : > { %v1287_v53 = vsel %vm3445_vm3, 0, %v1286_v26  ;;  %v1318_v54 = vsel %vm3455_vm4, 0, %v1317_v31  ;;  %v1242_v55 = vsel %vm3440_vm1, %v1147_v44, %v1241_v40  ;;  %v1245_v21 = vsel %vm3445_vm3, %v1148_v45, %v1244_v41  ;;  %v3524_v60 = vld [vmem:[#allocation2 + $0x8] sm:$0xe] }
 0x194   : > { %1288 = vst [vmem:[#allocation2 + $0x8] sm:$0x1] %v1287_v53  ;;  %1319 = vst [vmem:[#allocation2 + $0xc] sm:$0x1] %v1318_v54  ;;  %v1150_v58 = vshrl.u32 %v2788_v48, 16  ;;  %v1000_v59 = vsel %vm980_vm0, %v956_v34, %v990_v50  ;;  %v1153_v4 = vshll.u32 %v2788_v48, 16 }
 0x195   : > { %1243 = vst [vmem:[#allocation2 + $0x18] sm:$0xf] %v1242_v55  ;;  %1246 = vst [vmem:[#allocation2 + $0x1c] sm:$0x1] %v1245_v21  ;;  %v3530_v62 = vld [vmem:[#allocation2 + $0x8] sm:$0xe]  ;;  %v2789_v2 = vpack.c.bf16 %v1000_v59, %v1000_v59 }
 0x196   : > { %v960_v46 = vpop.f32.mrb[12].mxu0  ;;  %v1152_v1 = vrot.slane %v1150_v58, 7  ;;  %v2693_v17 = vrot.slane %v3524_v60, 9  ;;  %v2700_v19 = vrot.slane %v3530_v62, 9 }
 0x197   : > { %v961_v9 = vadd.f32 %v3478_v16, %v960_v46  ;;  %v2836_v11 = vpop.f32.mrb[13].mxu0  ;;  %v1158_v13 = vshrl.u32 %v2789_v2, 16  ;;  %v1161_v14 = vshll.u32 %v2789_v2, 16 }
 0x198   : > { %v963_v15 = vpop.f32.mrb[14].mxu0  ;;  %v1289_v20 = vld [vmem:[#allocation2 + $0x10] sm:$0x1]  ;;  %v1320_v22 = vld [vmem:[#allocation2 + $0x14] sm:$0x1]  ;;  %v1155_v7 = vor.u32 %v1153_v4, %v1152_v1  ;;  %v1156_v23 = vrot.slane %v1152_v1, 4 }
 0x199   : > { %vm981_vm6 = vcmp.gt.f32.partialorder %v961_v9, 0.0  ;;  %v964_v47 = vadd.f32 %v3478_v16, %v963_v15  ;;  %v1290_v29 = vsel %vm3445_vm3, 0, %v1289_v20  ;;  %v1321_v30 = vsel %vm3455_vm4, 0, %v1320_v22  ;;  %v2837_v5 = vpop.f32.mrb[15].mxu0  ;;  %v3552_v39 = vld [vmem:[#allocation2 + $0x10] sm:$0xe] }
 0x19a   : > { %v1160_v32 = vrot.slane %v1158_v13, 7  ;;  %v991_v33 = vmul.f32 0.01, %v961_v9  ;;  %1291 = vst [vmem:[#allocation2 + $0x10] sm:$0x1] %v1290_v29  ;;  %v1248_v34 = vsel %vm3440_vm1, %v1155_v7, %v1247_v0  ;;  %v1251_v36 = vsel %vm3445_vm3, %v1156_v23, %v1250_v6 }
 0x19b   : > { %1322 = vst [vmem:[#allocation2 + $0x14] sm:$0x1] %v1321_v30  ;;  %vm982_vm8 = vcmp.gt.f32.partialorder %v964_v47, 0.0  ;;  %v992_v38 = vmul.f32 0.01, %v964_v47  ;;  %v2694_v45 = vrot.slane %v3552_v39, 9 }
 0x19c   : > { %v1292_v40 = vld [vmem:[#allocation2 + $0x18] sm:$0x1]  ;;  %v1323_v41 = vld [vmem:[#allocation2 + $0x1c] sm:$0x1]  ;;  %1249 = vst [vmem:[#allocation2 + $0x20] sm:$0xf] %v1248_v34  ;;  %v1163_v56 = vor.u32 %v1161_v14, %v1160_v32  ;;  %v1001_v44 = vsel %vm981_vm6, %v961_v9, %v991_v33 }
 0x19d   : > { %1252 = vst [vmem:[#allocation2 + $0x24] sm:$0x1] %v1251_v36  ;;  %v1164_v43 = vrot.slane %v1160_v32, 4  ;;  %v1293_v48 = vsel %vm3445_vm3, 0, %v1292_v40  ;;  %v1324_v26 = vsel %vm3455_vm4, 0, %v1323_v41  ;;  %v2790_v31 = vpack.c.bf16 %v1001_v44, %v1001_v44 }
 0x19e   : > { %v1002_v50 = vsel %vm982_vm8, %v964_v47, %v992_v38  ;;  %v3560_v53 = vld [vmem:[#allocation2 + $0xc] sm:$0x1]  ;;  %v3562_v54 = vld [vmem:[#allocation2 + $0x8] sm:$0xf]  ;;  %1294 = vst [vmem:[#allocation2 + $0x18] sm:$0x1] %v1293_v48  ;;  %v1254_v55 = vsel %vm3440_vm1, %v1163_v56, %v1253_v24 }
 0x19f   : > { %1325 = vst [vmem:[#allocation2 + $0x1c] sm:$0x1] %v1324_v26  ;;  %v1257_v21 = vsel %vm3445_vm3, %v1164_v43, %v1256_v28  ;;  %v2791_v58 = vpack.c.bf16 %v1002_v50, %v1002_v50  ;;  %v1505_v59 = vrot.slane %v3560_v53, 5  ;;  %v3569_v60 = vld [vmem:[#allocation2 + $0x18] sm:$0xe]  ;;  %v1166_v0 = vshrl.u32 %v2790_v31, 16 }
 0x1a0   : > { %1255 = vst [vmem:[#allocation2 + $0x28] sm:$0xf] %v1254_v55  ;;  %1258 = vst [vmem:[#allocation2 + $0x2c] sm:$0x1] %v1257_v21  ;;  %v1169_v2 = vshll.u32 %v2790_v31, 16  ;;  %v1549_v46 = vshrl.u32 %v3562_v54, 16 }
 0x1a1   : > { %v1552_v1 = vshll.u32 %v3562_v54, 16  ;;  %v1259_v4 = vld [vmem:[#allocation2 + $0x30] sm:$0xf]  ;;  %v1262_v6 = vld [vmem:[#allocation2 + $0x34] sm:$0x1]  ;;  %v1174_v9 = vshrl.u32 %v2791_v58, 16  ;;  %v1506_v14 = vsel %vm3498_vm15, %v2693_v17, %v1505_v59  ;;  %v3590_v17 = vsel %vm3498_vm15, %v2715_v63, %v1899_v42 }
 0x1a2   : > { %v1177_v11 = vshll.u32 %v2791_v58, 16  ;;  %v968_v13 = vpop.f32.mrb[16].mxu0  ;;  %v2695_v15 = vrot.slane %v3569_v60, 9  ;;  %v1168_v20 = vrot.slane %v1166_v0, 7  ;;  %v1265_v22 = vld [vmem:[#allocation2 + $0x38] sm:$0xf]  ;;  %v2732_v24 = vcombine.low %v3514_v52, %v1506_v14 }
 0x1a3   : > { %v1268_v7 = vld [vmem:[#allocation2 + $0x3c] sm:$0x1]  ;;  %v969_v23 = vadd.f32 %v3478_v16, %v968_v13  ;;  %v3578_v28 = vrot.slane %v1549_v46, 4  ;;  %v2840_v47 = vpop.f32.mrb[17].mxu0  ;;  %v1176_v29 = vrot.slane %v1174_v9, 7  ;;  %v3580_v32 = vrot.slane %v1552_v1, 5 }
 0x1a4   : > { %v1533_v30 = vld [vmem:[#allocation2 + $0x10] sm:$0xf]  ;;  %v3582_v33 = vld [vmem:[#allocation2 + $0x14] sm:$0x1]  ;;  %v1838_v16 = vor.u32 %v3535_v3, %v3533_v57  ;;  %v1295_v52 = vld [vmem:[#allocation2 + $0x20] sm:$0x1]  ;;  %v1171_v34 = vor.u32 %v1169_v2, %v1168_v20  ;;  %1961 = vrot.lane.b32.xlu1 %v2732_v24, %s3085_s12 }
 0x1a5   : > { %v1326_v5 = vld [vmem:[#allocation2 + $0x24] sm:$0x1]  ;;  %v1172_v36 = vrot.slane %v1168_v20, 4  ;;  %vm983_vm10 = vcmp.gt.f32.partialorder %v969_v23, 0.0  ;;  %v2736_v38 = vcombine.low %v3562_v54, %v1533_v30  ;;  %v1296_v37 = vsel %vm3445_vm3, 0, %v1295_v52  ;;  %v971_v41 = vpop.f32.mrb[18].mxu0 }
 0x1a6   : > { %v1327_v49 = vsel %vm3455_vm4, 0, %v1326_v5  ;;  %v1179_v63 = vor.u32 %v1177_v11, %v1176_v29  ;;  %v1180_v42 = vrot.slane %v1176_v29, 4  ;;  %v1717_v40 = vld [vmem:[#allocation2 + $0x10] sm:$0xf]  ;;  %1297 = vst [vmem:[#allocation2 + $0x20] sm:$0x1] %v1296_v37  ;;  %v1260_v56 = vsel %vm3440_vm1, %v1171_v34, %v1259_v4 }
 0x1a7   : > { %1328 = vst [vmem:[#allocation2 + $0x24] sm:$0x1] %v1327_v49  ;;  %v1263_v43 = vsel %vm3445_vm3, %v1172_v36, %v1262_v6  ;;  %v993_v44 = vmul.f32 0.01, %v969_v23  ;;  %v1563_v48 = vshrl.u32 %v1533_v30, 16  ;;  %v2841_v31 = vpop.f32.mrb[19].mxu0 }
 0x1a8   : > { %v3604_v26 = vld [vmem:[#allocation2 + $0x1c] sm:$0x1]  ;;  %v1298_v50 = vld [vmem:[#allocation2 + $0x28] sm:$0x1]  ;;  %v1329_v54 = vld [vmem:[#allocation2 + $0x2c] sm:$0x1]  ;;  %v1266_v55 = vsel %vm3440_vm1, %v1179_v63, %v1265_v22  ;;  %v1269_v21 = vsel %vm3445_vm3, %v1180_v42, %v1268_v7  ;;  %1989 = vrot.lane.b32.xlu1 %v2736_v38, %s3078_s11  ;;  %v1555_v31 = vor.u32 %v3580_v32, %v3578_v28 }
 0x1a9   : > { %1261 = vst [vmem:[#allocation2 + $0x30] sm:$0xf] %v1260_v56  ;;  %1264 = vst [vmem:[#allocation2 + $0x34] sm:$0x1] %v1263_v43  ;;  %v1566_v58 = vshll.u32 %v1533_v30, 16  ;;  %v1509_v59 = vrot.slane %v3582_v33, 5  ;;  %v1003_v46 = vsel %vm983_vm10, %v969_v23, %v993_v44 }
 0x1aa   : > { %v1299_v0 = vsel %vm3445_vm3, 0, %v1298_v50  ;;  %v1330_v2 = vsel %vm3455_vm4, 0, %v1329_v54  ;;  %1267 = vst [vmem:[#allocation2 + $0x38] sm:$0xf] %v1266_v55  ;;  %1270 = vst [vmem:[#allocation2 + $0x3c] sm:$0x1] %v1269_v21  ;;  %v2792_v6 = vpack.c.bf16 %v1003_v46, %v1003_v46 }
 0x1ab   : > { %v3617_v1 = vrot.slane %v1563_v48, 4  ;;  %v1718_v4 = vld [vmem:[#allocation2 + $0x18] sm:$0xf]  ;;  %1300 = vst [vmem:[#allocation2 + $0x28] sm:$0x1] %v1299_v0  ;;  %v3619_v9 = vrot.slane %v1566_v58, 5  ;;  %v1510_v11 = vsel %vm3498_vm15, %v2694_v45, %v1509_v59 }
 0x1ac   : > { %1331 = vst [vmem:[#allocation2 + $0x2c] sm:$0x1] %v1330_v2  ;;  %v1513_v13 = vrot.slane %v3604_v26, 5  ;;  %v1734_v14 = vshrl.u32 %v1717_v40, 16  ;;  %v1737_v20 = vshll.u32 %v1717_v40, 16  ;;  %v2748_v22 = vcombine.low %v1717_v40, %v1718_v4 }
 0x1ad   : > { %v1748_v7 = vshrl.u32 %v1718_v4, 16  ;;  %v3626_v23 = vld [vmem:[#allocation2 + $0x8] sm:$0xf]  ;;  %v1182_v24 = vshrl.u32 %v2792_v6, 16  ;;  %v1185_v47 = vshll.u32 %v2792_v6, 16  ;;  %v1751_v30 = vshll.u32 %v1718_v4, 16 }
 0x1ae   : > { %v1514_v29 = vsel %vm3498_vm15, %v2695_v15, %v1513_v13  ;;  %v1534_v39 = vld [vmem:[#allocation2 + $0x18] sm:$0xf]  ;;  %v1271_v52 = vld [vmem:[#allocation2 + $0x40] sm:$0xf]  ;;  %v3632_v45 = vrot.slane %v1734_v14, 4  ;;  %v3634_v34 = vrot.slane %v1737_v20, 5  ;;  %2057 = vrot.lane.b32.xlu1 %v2748_v22, %s3086_s14 }
 0x1af   : > { %v2733_v5 = vcombine.low %v1510_v11, %v1514_v29  ;;  %v3637_v36 = vrot.slane %v1748_v7, 4  ;;  %v1184_v38 = vrot.slane %v1182_v24, 7  ;;  %v1274_v37 = vld [vmem:[#allocation2 + $0x44] sm:$0x1]  ;;  %v3639_v49 = vrot.slane %v1751_v30, 5 }
 0x1b0   : > { %v1375_v60 = vshrl.u32 %v3626_v23, 16  ;;  %v1378_v15 = vshll.u32 %v3626_v23, 16  ;;  %v1535_v63 = vld [vmem:[#allocation2 + $0x20] sm:$0xf]  ;;  %v1301_v42 = vld [vmem:[#allocation2 + $0x30] sm:$0x1] }
 0x1b1   : > { %v1332_v40 = vld [vmem:[#allocation2 + $0x34] sm:$0x1]  ;;  %1963 = vrot.lane.b32.xlu0 %v2733_v5, %s3085_s12  ;;  %v1384_v41 = vshll.u32 %v3560_v53, 16  ;;  %v1577_v56 = vshrl.u32 %v1534_v39, 16  ;;  %v2737_v43 = vcombine.low %v1534_v39, %v1535_v63  ;;  %v3645_v44 = vld [vmem:[#allocation2 + $0xc] sm:$0x1]  ;;  %v1187_v58 = vor.u32 %v1185_v47, %v1184_v38 }
 0x1b2   : > { %v1661_v48 = vld [vmem:[#allocation2 + $0x10] sm:$0xe]  ;;  %v1302_v50 = vsel %vm3445_vm3, 0, %v1301_v42  ;;  %v1333_v54 = vsel %vm3455_vm4, 0, %v1332_v40  ;;  %v1304_v55 = vld [vmem:[#allocation2 + $0x38] sm:$0x1]  ;;  %v1569_v53 = vor.u32 %v3619_v9, %v3617_v1 }
 0x1b3   : > { %v1335_v21 = vld [vmem:[#allocation2 + $0x3c] sm:$0x1]  ;;  %1303 = vst [vmem:[#allocation2 + $0x30] sm:$0x1] %v1302_v50  ;;  %1334 = vst [vmem:[#allocation2 + $0x34] sm:$0x1] %v1333_v54  ;;  %v1272_v6 = vsel %vm3440_vm1, %v1187_v58, %v1271_v52 }
 0x1b4   : > { %v1305_v59 = vsel %vm3445_vm3, 0, %v1304_v55  ;;  %v1336_v0 = vsel %vm3455_vm4, 0, %v1335_v21  ;;  %v1188_v2 = vrot.slane %v1184_v38, 4  ;;  %v1377_v46 = vrot.slane %v1375_v60, 4  ;;  %v3659_v4 = vld [vmem:[#allocation2 + $0x14] sm:$0x1] }
 0x1b5   : > { %1306 = vst [vmem:[#allocation2 + $0x38] sm:$0x1] %v1305_v59  ;;  %1337 = vst [vmem:[#allocation2 + $0x3c] sm:$0x1] %v1336_v0  ;;  %v1380_v11 = vrot.slane %v1378_v15, 5  ;;  %v1386_v13 = vrot.slane %v1384_v41, 5  ;;  %1991 = vrot.lane.b32.xlu0 %v2737_v43, %s3078_s11 }
 0x1b6   : > { %v3663_v14 = vrot.slane %v1577_v56, 4  ;;  %v1719_v20 = vld [vmem:[#allocation2 + $0x20] sm:$0xf]  ;;  %1273 = vst [vmem:[#allocation2 + $0x40] sm:$0xf] %v1272_v6  ;;  %v1275_v7 = vsel %vm3445_vm3, %v1188_v2, %v1274_v37  ;;  %v1580_v24 = vshll.u32 %v1534_v39, 16 }
 0x1b7   : > { %v2970_v22 = vld [vmem:[%s4166_s3] sm:$0xff]   ;;  %v1591_v47 = vshrl.u32 %v1535_v63, 16  ;;  %v1594_v29 = vshll.u32 %v1535_v63, 16  ;;  %1276 = vst [vmem:[#allocation2 + $0x44] sm:$0x1] %v1275_v7  ;;  %v1381_v8 = vor.u32 %v1380_v11, %v1377_v46  ;;  %v1686_v30 = vrot.slane %v3645_v44, 5 }
 0x1b8   : > { %v2701_v52 = vrot.slane %v1661_v48, 9  ;;  %v1690_v5 = vrot.slane %v3659_v4, 5  ;;  %v1720_v38 = vld [vmem:[#allocation2 + $0x28] sm:$0xf]  ;;  %2842 = vmatprep.subr.bf16.mxu1 %v2970_v22  ;;  %v3673_v60 = vrot.slane %v1580_v24, 5  ;;  %v1762_v39 = vshrl.u32 %v1719_v20, 16 }
 0x1b9   : > { %v3675_v15 = vrot.slane %v1591_v47, 4  ;;  %v3677_v42 = vrot.slane %v1594_v29, 5  ;;  %v1845_v37 = vld [vmem:[#allocation2 + $0x10] sm:$0xe]  ;;  %2843 = vmatpush3.bf16.msra.mxu1 %v2970_v22  ;;  %v1382_v40 = vrot.slane %v1381_v8, 4  ;;  %v1687_v63 = vsel %vm3498_vm15, %v2700_v19, %v1686_v30 }
 0x1ba   : > { %v1691_v41 = vsel %vm3498_vm15, %v2701_v52, %v1690_v5  ;;  %v1765_v56 = vshll.u32 %v1719_v20, 16  ;;  %v3685_v43 = vld [vmem:[#allocation2 + $0x14] sm:$0x1]  ;;  %v1846_v48 = vld [vmem:[#allocation2 + $0x18] sm:$0xe]  ;;  %v3687_v54 = vrot.slane %v1762_v39, 4  ;;  %v2749_v55 = vcombine.low %v1719_v20, %v1720_v38 }
 0x1bb   : > { %v2744_v50 = vcombine.low %v1687_v63, %v1691_v41  ;;  %v1776_v21 = vshrl.u32 %v1720_v38, 16  ;;  %v3689_v58 = vld [vmem:[#allocation2 + $0x1c] sm:$0x1]  ;;  %v3691_v59 = vld [vmem:[#allocation2 + $0x10] sm:$0xf]  ;;  %v1387_v62 = vsel %vm3233_vm2, %v1382_v40, %v1386_v13  ;;  %v1779_v0 = vshll.u32 %v1720_v38, 16 }
 0x1bc   : > { %v3695_v19 = vrot.slane %v1765_v56, 5  ;;  %v2708_v2 = vrot.slane %v1845_v37, 9  ;;  %v3697_v46 = vld [vmem:[#allocation2 + $0x18] sm:$0xf]  ;;  %v2728_v6 = vcombine.low %v1373_v61, %v1387_v62  ;;  %2059 = vrot.lane.b32.xlu0 %v2749_v55, %s3086_s14  ;;  %v1871_v20 = vrot.slane %v3685_v43, 5  ;;  %v2972_v40 = vld [vmem:[%s4166_s3 + $0x8] sm:$0xff]  }
 0x1bd   : > { %v3705_v11 = vrot.slane %v1776_v21, 4  ;;  %v2709_v22 = vrot.slane %v1846_v48, 9  ;;  %v1307_v13 = vld [vmem:[#allocation2 + $0x40] sm:$0x1]  ;;  %v3708_v7 = vrot.slane %v1779_v0, 5  ;;  %v1875_v24 = vrot.slane %v3689_v58, 5  ;;  %2844 = vmatprep.subr.bf16.mxu1 %v2972_v40 }
 0x1be   : > { %v1389_v47 = vshrl.u32 %v3691_v59, 16  ;;  %v1392_v29 = vshll.u32 %v3691_v59, 16  ;;  %v1308_v25 = vsel %vm3445_vm3, 0, %v1307_v13  ;;  %v1338_v27 = vld [vmem:[#allocation2 + $0x44] sm:$0x1]  ;;  %1941 = vrot.lane.b32.xlu1 %v2728_v6, %s3080_s19  ;;  %v1872_v61 = vsel %vm3498_vm15, %v2708_v2, %v1871_v20  ;;  %v2973_v2 = vld [vmem:[%s4166_s3 + $0x10] sm:$0xff]   ;;  %2845 = vmatpush3.bf16.msra.mxu1 %v2972_v40 }
 0x1bf   : > { %v1398_v8 = vshll.u32 %v3582_v33, 16  ;;  %v1403_v30 = vshrl.u32 %v3697_v46, 16  ;;  %v3720_v52 = vld [vmem:[#allocation2 + $0x1c] sm:$0x1]  ;;  %1309 = vst [vmem:[#allocation2 + $0x40] sm:$0x1] %v1308_v25  ;;  %v1876_v10 = vsel %vm3498_vm15, %v2709_v22, %v1875_v24  ;;  %2846 = vmatprep.subr.bf16.mxu1 %v2973_v2  ;;  %v2725_v35 = vcombine.low %v3691_v59, %v3697_v46 }
 0x1c0   : > { %v1339_v5 = vsel %vm3455_vm4, 0, %v1338_v27  ;;  %v1391_v38 = vrot.slane %v1389_v47, 4  ;;  %v1394_v39 = vrot.slane %v1392_v29, 5  ;;  %v1662_v37 = vld [vmem:[#allocation2 + $0x18] sm:$0xe]  ;;  %v2756_v33 = vcombine.low %v1872_v61, %v1876_v10 }
 0x1c1   : > { %1340 = vst [vmem:[#allocation2 + $0x44] sm:$0x1] %v1339_v5  ;;  %v1400_v63 = vrot.slane %v1398_v8, 5  ;;  %v1405_v41 = vrot.slane %v1403_v30, 4  ;;  %v1406_v56 = vshll.u32 %v3697_v46, 16  ;;  %v1412_v55 = vshll.u32 %v3604_v26, 16 }
 0x1c2   : > { %v3730_v48 = vld [vmem:[#allocation2 + $0x24] sm:$0x1]  ;;  %v1395_v18 = vor.u32 %v1394_v39, %v1391_v38  ;;  %v1556_v21 = vrot.slane %v1555_v31, 4  ;;  %v1558_v62 = vshll.u32 %v3645_v44, 16  ;;  %v1663_v0 = vld [vmem:[#allocation2 + $0x20] sm:$0xe]  ;;  %2029 = vrot.lane.b32.xlu1 %v2744_v50, %s3087_s21  ;;  %2847 = vmatpush3.bf16.msra.mxu1 %v2973_v2 }
 0x1c3   : > { %v1408_v6 = vrot.slane %v1406_v56, 5  ;;  %v1570_v26 = vrot.slane %v1569_v53, 4  ;;  %v1572_v20 = vshll.u32 %v3659_v4, 16  ;;  %v2702_v28 = vrot.slane %v1662_v37, 9  ;;  %v3755_v4 = vld [vmem:[#allocation2 + $0x24] sm:$0x1] }
 0x1c4   : > { %v1396_v32 = vrot.slane %v1395_v18, 4  ;;  %v1414_v44 = vrot.slane %v1412_v55, 5  ;;  %v1560_v31 = vrot.slane %v1558_v62, 5  ;;  %v1694_v22 = vrot.slane %v3720_v52, 5  ;;  %v3757_v25 = vld [vmem:[#allocation2 + $0x2c] sm:$0x1] }
 0x1c5   : > { %v1409_v13 = vor.u32 %v1408_v6, %v1405_v41  ;;  %v1574_v24 = vrot.slane %v1572_v20, 5  ;;  %v2703_v47 = vrot.slane %v1663_v0, 9  ;;  %v1698_v50 = vrot.slane %v3730_v48, 5  ;;  %v1476_v27 = vld [vmem:[#allocation2 + $0x20] sm:$0xe] }
 0x1c6   : > { %v1401_v29 = vsel %vm3233_vm2, %v1396_v32, %v1400_v63  ;;  %v1561_v1 = vsel %vm3233_vm2, %v1556_v21, %v1560_v31  ;;  %v1695_v9 = vsel %vm3498_vm15, %v2702_v28, %v1694_v22  ;;  %v1740_v53 = vor.u32 %v3634_v34, %v3632_v45  ;;  %2097 = vrot.lane.b32.xlu1 %v2756_v33, %s3088_s22  ;;  %v1477_v10 = vld [vmem:[#allocation2 + $0x28] sm:$0xe]  ;;  %v1727_v38 = vld [vmem:[#allocation2 + $0x24] sm:$0x1]  ;;  %v1728_v40 = vld [vmem:[#allocation2 + $0x2c] sm:$0x1] }
 0x1c7   : > { %v1410_v61 = vrot.slane %v1409_v13, 4  ;;  %v1575_v8 = vsel %vm3233_vm2, %v1570_v26, %v1574_v24  ;;  %v1699_v30 = vsel %vm3498_vm15, %v2703_v47, %v1698_v50  ;;  %v1743_v5 = vshll.u32 %v3685_v43, 16  ;;  %v1847_v33 = vld [vmem:[#allocation2 + $0x20] sm:$0xe]  ;;  %v2974_v63 = vld [vmem:[%s4166_s3 + $0x18] sm:$0xff]  }
 0x1c8   : > { %v2740_v45 = vcombine.low %v1561_v1, %v1575_v8  ;;  %v2745_v34 = vcombine.low %v1695_v9, %v1699_v30  ;;  %v1741_v39 = vrot.slane %v1740_v53, 4  ;;  %v1754_v37 = vor.u32 %v3639_v49, %v3637_v36  ;;  %v1848_v55 = vld [vmem:[#allocation2 + $0x28] sm:$0xe]  ;;  %2848 = vmatprep.subr.bf16.mxu1 %v2974_v63  ;;  %v1537_v30 = vld [vmem:[#allocation2 + $0x30] sm:$0xf] }
 0x1c9   : > { %v1415_v41 = vsel %vm3233_vm2, %v1410_v61, %v1414_v44  ;;  %v1745_v56 = vrot.slane %v1743_v5, 5  ;;  %v1757_v43 = vshll.u32 %v3689_v58, 16  ;;  %v2696_v18 = vrot.slane %v1476_v27, 9  ;;  %2849 = vmatpush3.bf16.msra.mxu1 %v2974_v63  ;;  %v1536_v1 = vld [vmem:[#allocation2 + $0x28] sm:$0xf] }
 0x1ca   : > { %v2729_v21 = vcombine.low %v1401_v29, %v1415_v41  ;;  %v1755_v62 = vrot.slane %v1754_v37, 4  ;;  %v1517_v0 = vrot.slane %v3755_v4, 5  ;;  %v2697_v2 = vrot.slane %v1477_v10, 9  ;;  %2009 = vrot.lane.b32.xlu1 %v2740_v45, %s3081_s20  ;;  %v3813_v41 = vld [vmem:[#allocation2 + $0x28] sm:$0xf] }
 0x1cb   : > { %v1746_v36 = vsel %vm3233_vm2, %v1741_v39, %v1745_v56  ;;  %v1759_v49 = vrot.slane %v1757_v43, 5  ;;  %v1521_v6 = vrot.slane %v3757_v25, 5  ;;  %v2710_v26 = vrot.slane %v1847_v33, 9  ;;  %v3803_v33 = vld [vmem:[#allocation2 + $0x20] sm:$0xf] }
 0x1cc   : > { %1943 = vrot.lane.b32.xlu0 %v2729_v21, %s3080_s19  ;;  %v1518_v58 = vsel %vm3498_vm15, %v2696_v18, %v1517_v0  ;;  %v1879_v20 = vrot.slane %v1727_v38, 5  ;;  %v2711_v28 = vrot.slane %v1848_v55, 9  ;;  %v1883_v32 = vrot.slane %v1728_v40, 5  ;;  %v1721_v21 = vld [vmem:[#allocation2 + $0x30] sm:$0xf] }
 0x1cd   : > { %v1760_v44 = vsel %vm3233_vm2, %v1755_v62, %v1759_v49  ;;  %v1522_v31 = vsel %vm3498_vm15, %v2697_v2, %v1521_v6  ;;  %v1583_v22 = vor.u32 %v3673_v60, %v3663_v14  ;;  %v1586_v13 = vshll.u32 %v3720_v52, 16  ;;  %v1722_v49 = vld [vmem:[#allocation2 + $0x38] sm:$0xf]  ;;  %v2967_v46 = vld [vmem:[%s3202_s25 + $0x28] ss:$8 sps:$4 sm:$0xff]  }
 0x1ce   : > { %v2752_v24 = vcombine.low %v1746_v36, %v1760_v44  ;;  %v2734_v47 = vcombine.low %v1518_v58, %v1522_v31  ;;  %v1880_v50 = vsel %vm3498_vm15, %v2710_v26, %v1879_v20  ;;  %v1884_v29 = vsel %vm3498_vm15, %v2711_v28, %v1883_v32  ;;  %v3828_v28 = vld [vmem:[#allocation2 + $0x34] sm:$0x1]  ;;  %v3830_v32 = vld [vmem:[#allocation2 + $0x3c] sm:$0x1]  ;;  %v1478_v44 = vld [vmem:[#allocation2 + $0x30] sm:$0xe] }
 0x1cf   : > { %v2757_v9 = vcombine.low %v1880_v50, %v1884_v29  ;;  %v1584_v53 = vrot.slane %v1583_v22, 4  ;;  %v1588_v27 = vrot.slane %v1586_v13, 5  ;;  %v1597_v61 = vor.u32 %v3677_v42, %v3675_v15 }
 0x1d0   : > { %2031 = vrot.lane.b32.xlu0 %v2745_v34, %s3087_s21  ;;  %2077 = vrot.lane.b32.xlu1 %v2752_v24, %s3089_s16  ;;  %v1600_v14 = vshll.u32 %v3730_v48, 16  ;;  %v1768_v60 = vor.u32 %v3695_v19, %v3687_v54  ;;  %v1771_v52 = vshll.u32 %v1727_v38, 16  ;;  %v1782_v8 = vor.u32 %v3708_v7, %v3705_v11 }
 0x1d1   : > { %v1589_v5 = vsel %vm3233_vm2, %v1584_v53, %v1588_v27  ;;  %v1598_v10 = vrot.slane %v1597_v61, 4  ;;  %v1785_v15 = vshll.u32 %v1728_v40, 16  ;;  %v1605_v42 = vshrl.u32 %v1536_v1, 16  ;;  %v1664_v53 = vld [vmem:[#allocation2 + $0x28] sm:$0xe] }
 0x1d2   : > { %v1602_v45 = vrot.slane %v1600_v14, 5  ;;  %v1769_v34 = vrot.slane %v1768_v60, 4  ;;  %v1773_v39 = vrot.slane %v1771_v52, 5  ;;  %v1783_v37 = vrot.slane %v1782_v8, 4  ;;  %v3841_v52 = vld [vmem:[#allocation2 + $0x34] sm:$0x1] }
 0x1d3   : > { %v1787_v48 = vrot.slane %v1785_v15, 5  ;;  %v3805_v63 = vrot.slane %v1605_v42, 4  ;;  %v1608_v54 = vshll.u32 %v1536_v1, 16  ;;  %v2738_v19 = vcombine.low %v1536_v1, %v1537_v30  ;;  %v1665_v8 = vld [vmem:[#allocation2 + $0x30] sm:$0xe] }
 0x1d4   : > { %1965 = vrot.lane.b32.xlu0 %v2734_v47, %s3085_s12  ;;  %2099 = vrot.lane.b32.xlu1 %v2757_v9, %s3088_s22  ;;  %v1603_v11 = vsel %vm3233_vm2, %v1598_v10, %v1602_v45  ;;  %v1774_v7 = vsel %vm3233_vm2, %v1769_v34, %v1773_v39  ;;  %v1619_v38 = vshrl.u32 %v1537_v30, 16  ;;  %v1622_v40 = vshll.u32 %v1537_v30, 16  ;;  %v1479_v47 = vld [vmem:[#allocation2 + $0x38] sm:$0xe]  ;;  %v3835_v9 = vld [vmem:[#allocation2 + $0x2c] sm:$0x1] }
 0x1d5   : > { %v2741_v56 = vcombine.low %v1589_v5, %v1603_v11  ;;  %v1788_v43 = vsel %vm3233_vm2, %v1783_v37, %v1787_v48  ;;  %v3817_v18 = vrot.slane %v1608_v54, 5  ;;  %v1417_v55 = vshrl.u32 %v3803_v33, 16  ;;  %v3843_v15 = vld [vmem:[#allocation2 + $0x34] sm:$0x1]  ;;  %v3849_v37 = vld [vmem:[#allocation2 + $0x3c] sm:$0x1] }
 0x1d6   : > { %v2753_v62 = vcombine.low %v1774_v7, %v1788_v43  ;;  %v3820_v0 = vrot.slane %v1619_v38, 4  ;;  %v3822_v2 = vrot.slane %v1622_v40, 5  ;;  %v1420_v36 = vshll.u32 %v3803_v33, 16  ;;  %v1849_v7 = vld [vmem:[#allocation2 + $0x30] sm:$0xe] }
 0x1d7   : > { %v1419_v6 = vrot.slane %v1417_v55, 4  ;;  %v1426_v26 = vshll.u32 %v3755_v4, 16  ;;  %v1431_v58 = vshrl.u32 %v3813_v41, 16  ;;  %v1434_v20 = vshll.u32 %v3813_v41, 16  ;;  %v1850_v55 = vld [vmem:[#allocation2 + $0x38] sm:$0xe] }
 0x1d8   : > { %2011 = vrot.lane.b32.xlu0 %v2741_v56, %s3081_s20  ;;  %1993 = vrot.lane.b32.xlu1 %v2738_v19, %s3078_s11  ;;  %v1422_v31 = vrot.slane %v1420_v36, 5  ;;  %v1440_v22 = vshll.u32 %v3757_v25, 16  ;;  %v1790_v13 = vshrl.u32 %v1721_v21, 16  ;;  %v1793_v24 = vshll.u32 %v1721_v21, 16 }
 0x1d9   : > { %v1428_v4 = vrot.slane %v1426_v26, 5  ;;  %v1433_v50 = vrot.slane %v1431_v58, 4  ;;  %v1436_v29 = vrot.slane %v1434_v20, 5  ;;  %v2750_v1 = vcombine.low %v1721_v21, %v1722_v49  ;;  %v1538_v21 = vld [vmem:[#allocation2 + $0x38] sm:$0xf] }
 0x1da   : > { %v1423_v27 = vor.u32 %v1422_v31, %v1419_v6  ;;  %v1442_v61 = vrot.slane %v1440_v22, 5  ;;  %v3837_v14 = vrot.slane %v1790_v13, 4  ;;  %v3839_v60 = vrot.slane %v1793_v24, 5  ;;  %v1539_v26 = vld [vmem:[#allocation2 + $0x40] sm:$0xf] }
 0x1db   : > { %v1437_v25 = vor.u32 %v1436_v29, %v1433_v50  ;;  %v1804_v30 = vshrl.u32 %v1722_v49, 16  ;;  %v1807_v5 = vshll.u32 %v1722_v49, 16  ;;  %v2698_v10 = vrot.slane %v1478_v44, 9 }
 0x1dc   : > { %2079 = vrot.lane.b32.xlu0 %v2753_v62, %s3089_s16  ;;  %v1424_v42 = vrot.slane %v1423_v27, 4  ;;  %2061 = vrot.lane.b32.xlu1 %v2750_v1, %s3086_s14  ;;  %v1525_v45 = vrot.slane %v3828_v28, 5  ;;  %v2699_v34 = vrot.slane %v1479_v47, 9  ;;  %v1529_v39 = vrot.slane %v3830_v32, 5 }
 0x1dd   : > { %v1438_v48 = vrot.slane %v1437_v25, 4  ;;  %v3851_v54 = vrot.slane %v1804_v30, 4  ;;  %v3853_v19 = vrot.slane %v1807_v5, 5  ;;  %v2704_v11 = vrot.slane %v1664_v53, 9  ;;  %v1723_v25 = vld [vmem:[#allocation2 + $0x40] sm:$0xf] }
 0x1de   : > { %v1429_v38 = vsel %vm3233_vm2, %v1424_v42, %v1428_v4  ;;  %v1526_v40 = vsel %vm3498_vm15, %v2698_v10, %v1525_v45  ;;  %v1530_v56 = vsel %vm3498_vm15, %v2699_v34, %v1529_v39  ;;  %v1702_v43 = vrot.slane %v3835_v9, 5  ;;  %v3884_v45 = vld [vmem:[#allocation2 + $0x30] sm:$0xf] }
 0x1df   : > { %v1443_v62 = vsel %vm3233_vm2, %v1438_v48, %v1442_v61  ;;  %v2735_v36 = vcombine.low %v1526_v40, %v1530_v56  ;;  %v2705_v49 = vrot.slane %v1665_v8, 9  ;;  %v1706_v6 = vrot.slane %v3841_v52, 5 }
 0x1e0   : > { %v2730_v58 = vcombine.low %v1429_v38, %v1443_v62  ;;  %v1703_v20 = vsel %vm3498_vm15, %v2704_v11, %v1702_v43  ;;  %v2712_v44 = vrot.slane %v1849_v7, 9  ;;  %v1887_v31 = vrot.slane %v3843_v15, 5  ;;  %v2994_v43 = vld [vmem:[#allocation2 + $0x48] sm:$0xf]  ;;  %v1546_v62 = vld [vmem:[#allocation2 + $0x3c] sm:$0x1] }
 0x1e1   : > { %v1707_v22 = vsel %vm3498_vm15, %v2705_v49, %v1706_v6  ;;  %v2713_v13 = vrot.slane %v1850_v55, 9  ;;  %v1891_v24 = vrot.slane %v3849_v37, 5  ;;  %v1633_v47 = vshrl.u32 %v1538_v21, 16  ;;  %v1666_v49 = vld [vmem:[#allocation2 + $0x38] sm:$0xe] }
 0x1e2   : > { %1945 = vrot.lane.b32.xlu0 %v2730_v58, %s3080_s19  ;;  %v2746_v4 = vcombine.low %v1703_v20, %v1707_v22  ;;  %v1888_v50 = vsel %vm3498_vm15, %v2712_v44, %v1887_v31  ;;  %v1636_v29 = vshll.u32 %v1538_v21, 16  ;;  %v2739_v1 = vcombine.low %v1538_v21, %v1539_v26  ;;  %v1667_v44 = vld [vmem:[#allocation2 + $0x40] sm:$0xe] }
 0x1e3   : > { %v1892_v53 = vsel %vm3498_vm15, %v2713_v13, %v1891_v24  ;;  %v3876_v27 = vrot.slane %v1633_v47, 4  ;;  %v1647_v61 = vshrl.u32 %v1539_v26, 16  ;;  %v1650_v8 = vshll.u32 %v1539_v26, 16  ;;  %v1547_v47 = vld [vmem:[#allocation2 + $0x44] sm:$0x1] }
 0x1e4   : > { %2033 = vrot.lane.b32.xlu1 %v2746_v4, %s3087_s21  ;;  %v2758_v30 = vcombine.low %v1888_v50, %v1892_v53  ;;  %v3879_v5 = vrot.slane %v1636_v29, 5  ;;  %v1611_v10 = vor.u32 %v3817_v18, %v3805_v63  ;;  %v1614_v42 = vshll.u32 %v3835_v9, 16  ;;  %v3894_v63 = vld [vmem:[#allocation2 + $0x38] sm:$0xf] }
 0x1e5   : > { %v3886_v34 = vrot.slane %v1647_v61, 4  ;;  %v3888_v39 = vrot.slane %v1650_v8, 5  ;;  %v1625_v48 = vor.u32 %v3822_v2, %v3820_v0  ;;  %v1628_v11 = vshll.u32 %v3841_v52, 16 }
 0x1e6   : > { %1967 = vrot.lane.b32.xlu0 %v2735_v36, %s3085_s12  ;;  %v1612_v7 = vrot.slane %v1611_v10, 4  ;;  %v1616_v38 = vrot.slane %v1614_v42, 5  ;;  %v1818_v40 = vshrl.u32 %v1723_v25, 16  ;;  %v1821_v56 = vshll.u32 %v1723_v25, 16 }
 0x1e7   : > { %v1626_v18 = vrot.slane %v1625_v48, 4  ;;  %v1630_v9 = vrot.slane %v1628_v11, 5  ;;  %v2751_v55 = vcombine.low %v1723_v25, %v2994_v43  ;;  %v1445_v21 = vshrl.u32 %v3884_v45, 16 }
 0x1e8   : > { %2101 = vrot.lane.b32.xlu1 %v2758_v30, %s3088_s22  ;;  %v1617_v0 = vsel %vm3233_vm2, %v1612_v7, %v1616_v38  ;;  %v3900_v2 = vrot.slane %v1818_v40, 4  ;;  %v3902_v52 = vrot.slane %v1821_v56, 5  ;;  %v1448_v36 = vshll.u32 %v3884_v45, 16  ;;  %v1851_v30 = vld [vmem:[#allocation2 + $0x40] sm:$0xe] }
 0x1e9   : > { %v1631_v6 = vsel %vm3233_vm2, %v1626_v18, %v1630_v9  ;;  %v1447_v26 = vrot.slane %v1445_v21, 4  ;;  %v1454_v58 = vshll.u32 %v3828_v28, 16  ;;  %v1459_v20 = vshrl.u32 %v3894_v63, 16  ;;  %v1731_v40 = vld [vmem:[#allocation2 + $0x44] sm:$0x1] }
 0x1ea   : > { %1995 = vrot.lane.b32.xlu0 %v2739_v1, %s3078_s11  ;;  %v2742_v31 = vcombine.low %v1617_v0, %v1631_v6  ;;  %v1450_v22 = vrot.slane %v1448_v36, 5  ;;  %v1462_v13 = vshll.u32 %v3894_v63, 16  ;;  %v1468_v24 = vshll.u32 %v3830_v32, 16  ;;  %s320_s11 = sand.u32 1, %s3058_s28  }
 0x1eb   : > { %v1456_v4 = vrot.slane %v1454_v58, 5  ;;  %v1461_v50 = vrot.slane %v1459_v20, 4  ;;  %v2706_v29 = vrot.slane %v1666_v49, 9  ;;  %v1710_v53 = vrot.slane %v1546_v62, 5  ;;  %s2631_s12 = sshll.u32 %s320_s11, 6 }
 0x1ec   : > { %2013 = vrot.lane.b32.xlu1 %v2742_v31, %s3081_s20  ;;  %v1451_v61 = vor.u32 %v1450_v22, %v1447_v26  ;;  %v1464_v28 = vrot.slane %v1462_v13, 5  ;;  %v1470_v8 = vrot.slane %v1468_v24, 5  ;;  %v2707_v25 = vrot.slane %v1667_v44, 9 }
 0x1ed   : > { %v1711_v1 = vsel %vm3498_vm15, %v2706_v29, %v1710_v53  ;;  %v1714_v10 = vrot.slane %v1547_v47, 5  ;;  %v1796_v42 = vor.u32 %v3839_v60, %v3837_v14  ;;  %v1799_v32 = vshll.u32 %v3843_v15, 16  ;;  %v2128_v53 = vpop.permute.xlu1 %2127 }
 0x1ee   : > { %2063 = vrot.lane.b32.xlu0 %v2751_v55, %s3086_s14  ;;  %v1452_v48 = vrot.slane %v1451_v61, 4  ;;  %v1465_v11 = vor.u32 %v1464_v28, %v1461_v50  ;;  %v1810_v7 = vor.u32 %v3853_v19, %v3851_v54  ;;  %v1813_v38 = vshll.u32 %v3849_v37, 16  ;;  %s4083_s14 = scalar_lea.vmem [#allocation3], %s2631_s12 }
 0x1ef   : > { %v1715_v56 = vsel %vm3498_vm15, %v2707_v25, %v1714_v10  ;;  %v1797_v18 = vrot.slane %v1796_v42, 4  ;;  %v1801_v9 = vrot.slane %v1799_v32, 5  ;;  %v2714_v43 = vrot.slane %v1851_v30, 9  ;;  %v2995_v42 = vld [vmem:[#allocation2] sm:$0xf] }
 0x1f0   : > { %v1457_v14 = vsel %vm3233_vm2, %v1452_v48, %v1456_v4  ;;  %v1466_v60 = vrot.slane %v1465_v11, 4  ;;  %v2747_v15 = vcombine.low %v1711_v1, %v1715_v56  ;;  %v1811_v55 = vrot.slane %v1810_v7, 4 }
 0x1f1   : > { %v1802_v21 = vsel %vm3233_vm2, %v1797_v18, %v1801_v9  ;;  %v1815_v0 = vrot.slane %v1813_v38, 5  ;;  %v1895_v54 = vrot.slane %v1731_v40, 5  ;;  %v1639_v37 = vor.u32 %v3879_v5, %v3876_v27 }
 0x1f2   : > { %v1471_v19 = vsel %vm3233_vm2, %v1466_v60, %v1470_v8  ;;  %2035 = vrot.lane.b32.xlu0 %v2747_v15, %s3087_s21  ;;  %v1642_v36 = vshll.u32 %v1546_v62, 16  ;;  %v1653_v49 = vor.u32 %v3888_v39, %v3886_v34  ;;  %v1656_v6 = vshll.u32 %v1547_v47, 16  ;;  %v2126_v8 = vpop.permute.xlu0 %2125  ;;  %s2793_s21 = sshll.u32 %s3066_s30, 10  ;;  %s4116_s30 = scalar_lea.sflag [#allocation4], %s320_s11 }
 0x1f3   : > { %v2731_v26 = vcombine.low %v1457_v14, %v1471_v19  ;;  %v1816_v58 = vsel %vm3233_vm2, %v1811_v55, %v1815_v0  ;;  %v1896_v20 = vsel %vm3498_vm15, %v2714_v43, %v1895_v54  ;;  %v1640_v44 = vrot.slane %v1639_v37, 4 }
 0x1f4   : > { %v2759_v27 = vcombine.low %v1896_v20, %v3590_v17  ;;  %v1644_v5 = vrot.slane %v1642_v36, 5  ;;  %v1654_v31 = vrot.slane %v1653_v49, 4  ;;  %v1839_v62 = vrot.slane %v1838_v16, 4  ;;  %v2975_v17 = vld [vmem:[%s4166_s3 + $0x20] sm:$0x3f]  }
 0x1f5   : > { %1947 = vrot.lane.b32.xlu1 %v2731_v26, %s3080_s19  ;;  %v1658_v34 = vrot.slane %v1656_v6, 5  ;;  %v1824_v39 = vor.u32 %v3902_v52, %v3900_v2  ;;  %v1827_v22 = vshll.u32 %v1731_v40, 16  ;;  %v2754_v13 = vcombine.low %v1802_v21, %v1816_v58 }
 0x1f6   : > { %2103 = vrot.lane.b32.xlu0 %v2759_v27, %s3088_s22  ;;  %v1645_v57 = vsel %vm3233_vm2, %v1640_v44, %v1644_v5  ;;  %v1844_v59 = vsel %vm3233_vm2, %v1839_v62, %v3539_v12  ;;  %vm2262_vm1 = vcmask 1045504   ;;  %v2726_v4 = vcombine.low %v3803_v33, %v3813_v41  ;;  %v2968_v12 = vld [vmem:[%s3202_s25 + $0x38] ss:$8 sps:$4 sm:$0xff]   ;;  %s2544_s25 = sshll.u32 %s4083_s14, 4  ;;  %s4104_s22 = scalar_lea.hbm %s4171_s8, %s2793_s21  ;;  %s4108_s25 = int_to_ptr.vmem [resolvable:$true] %s2544_s25 }
 0x1f7   : > { %v1659_v3 = vsel %vm3233_vm2, %v1654_v31, %v1658_v34  ;;  %v1825_v16 = vrot.slane %v1824_v39, 4  ;;  %v1829_v24 = vrot.slane %v1827_v22, 5  ;;  %2870 = vmatprep.subr.msk.bf16.mxu1 %vm2262_vm1, %v2975_v17  ;;  %v2264_v47 = vsel %vm2262_vm1, %v2975_v17, 0 }
 0x1f8   : > { %v2743_v2 = vcombine.low %v1645_v57, %v1659_v3  ;;  %v2727_v50 = vcombine.low %v3884_v45, %v3894_v63  ;;  %2851 = vmatpush3.bf16.msra.mxu1 %v2264_v47  ;;  %v2724_v32 = vcombine.low %v2995_v42, %v3626_v23  ;;  %vm2178_vm3 = vcmask 392192  }
 0x1f9   : > { %2081 = vrot.lane.b32.xlu1 %v2754_v13, %s3089_s16  ;;  %v1830_v52 = vsel %vm3233_vm2, %v1825_v16, %v1829_v24  ;;  %vm2169_vm2 = vcmask 326656   ;;  %vm2187_vm4 = vcmask 457728  }
 0x1fa   : > { %2015 = vrot.lane.b32.xlu0 %v2743_v2, %s3081_s20  ;;  %v2755_v29 = vcombine.low %v1830_v52, %v1844_v59 }
 0x1fd   : > { %2129 = vrot.lane.b32.xlu1 %v2967_v46, %s3084_s23 }
 0x1fe   : > { %2083 = vrot.lane.b32.xlu0 %v2755_v29, %s3089_s16  ;;  %s3000_s16 = sshll.u32 %s3091_s26, 4  ;;  %s3001_s16 = int_to_ptr.vmem [resolvable:$false] %s3000_s16 }
 0x1ff   : > { %s3002_s12 = scalar_lea.vmem %s3001_s16, 2048  ;;  %p3003_p1 = scmp.lt.s32.totalorder %s4108_s25, %s3001_s16 }
 0x201   : > { %2352 = vrot.lane.b32.xlu1 %v2774_v51, %s3080_s19 }
 0x202   : > { %2131 = vrot.lane.b32.xlu0 %v2968_v12, %s3084_s23 }
 0x216   : > { %v1962_v61 = vpop.permute.xlu1 %1961 }
 0x21a   : > { %v1990_v28 = vpop.permute.xlu1 %1989 }
 0x220   : > { %v2058_v25 = vpop.permute.xlu1 %2057 }
 0x223   : > { %v1964_v30 = vpop.permute.xlu0 %1963 }
 0x227   : > { %v1992_v10 = vpop.permute.xlu0 %1991 }
 0x22e   : > { %v2060_v7 = vpop.permute.xlu0 %2059 }
 0x230   : > { %v1942_v1 = vpop.permute.xlu1 %1941 }
 0x231   : > { %v2135_v11 = vsel %vm793_vm5, %v2724_v32, %v1942_v1 }
 0x232   : > { %v2146_v40 = vsel %vm815_vm7, %v2135_v11, %v1962_v61 }
 0x233   : > { %v2154_v56 = vsel %vm832_vm9, %v2146_v40, %v1990_v28 }
 0x234   : > { %v2030_v48 = vpop.permute.xlu1 %2029 }
 0x238   : > { %v2098_v38 = vpop.permute.xlu1 %2097 }
 0x23c   : > { %v2010_v18 = vpop.permute.xlu1 %2009 }
 0x23d   : > { %v2162_v43 = vsel %vm849_vm11, %v2154_v56, %v2010_v18 }
 0x23e   : > { %v1944_v9 = vpop.permute.xlu0 %1943  ;;  %v2171_v14 = vsel %vm2169_vm2, %v2162_v43, %v2030_v48  ;;  %v2375_v48 = vld [vmem:[%s4168_s5] sm:$0xf] }
 0x23f   : > { %v2180_v60 = vsel %vm2178_vm3, %v2171_v14, %v2058_v25  ;;  %v2138_v21 = vsel %vm793_vm5, %v2725_v35, %v1944_v9 }
 0x240   : > { %v2148_v36 = vsel %vm815_vm7, %v2138_v21, %v1964_v30 }
 0x241   : > { %v2156_v49 = vsel %vm832_vm9, %v2148_v36, %v1992_v10 }
 0x242   : > { %v2032_v23 = vpop.permute.xlu0 %2031  ;;  %v2078_v15 = vpop.permute.xlu1 %2077 }
 0x243   : > { %v2189_v55 = vsel %vm2187_vm4, %v2180_v60, %v2078_v15 }
 0x244   : > { %v2198_v0 = vsel %vm2196_vm12, %v2189_v55, %v2098_v38  ;;  %v2773_v38 = vld [vmem:[%s4167_s4] ss:$0 sm:$0xff] }
 0x245   : > { %v2207_v54 = vsel %vm2205_vm13, %v2198_v0, %v2126_v8 }
 0x246   : > { %v1966_v37 = vpop.permute.xlu0 %1965  ;;  %v2100_v19 = vpop.permute.xlu1 %2099  ;;  %2852 = vmatprep.mubr.msk.bf16.mxu1 %vm2253_vm14, %v2207_v54 }
 0x24a   : > { %v2012_v6 = vpop.permute.xlu0 %2011  ;;  %v1994_v26 = vpop.permute.xlu1 %1993 }
 0x24b   : > { %v2164_v58 = vsel %vm849_vm11, %v2156_v49, %v2012_v6 }
 0x24c   : > { %v2173_v20 = vsel %vm2169_vm2, %v2164_v58, %v2032_v23 }
 0x24d   : > { %v2182_v44 = vsel %vm2178_vm3, %v2173_v20, %v2060_v7 }
 0x24e   : > { %v2080_v27 = vpop.permute.xlu0 %2079  ;;  %v2062_v62 = vpop.permute.xlu1 %2061 }
 0x24f   : > { %v2191_v5 = vsel %vm2187_vm4, %v2182_v44, %v2080_v27 }
 0x250   : > { %v2200_v31 = vsel %vm2196_vm12, %v2191_v5, %v2100_v19 }
 0x251   : > { %v2209_v34 = vsel %vm2205_vm13, %v2200_v31, %v2128_v53 }
 0x252   : > { %2853 = vmatmul.mubr.msk.bf16.vlgmr.msra.gmra.mrb[0].mxu1 %vm2253_vm14, %v2209_v34 }
 0x254   : > { %v1946_v39 = vpop.permute.xlu0 %1945 }
 0x255   : > { %v2141_v57 = vsel %vm793_vm5, %v2726_v4, %v1946_v39 }
 0x256   : > { %v2034_v22 = vpop.permute.xlu1 %2033  ;;  %v2150_v16 = vsel %vm815_vm7, %v2141_v57, %v1966_v37 }
 0x257   : > { %v2158_v2 = vsel %vm832_vm9, %v2150_v16, %v1994_v26 }
 0x258   : > { %v1968_v35 = vpop.permute.xlu0 %1967 }
 0x25a   : > { %v2102_v17 = vpop.permute.xlu1 %2101 }
 0x25c   : > { %v1996_v13 = vpop.permute.xlu0 %1995 }
 0x25e   : > { %v2014_v24 = vpop.permute.xlu1 %2013 }
 0x25f   : > { %v2166_v46 = vsel %vm849_vm11, %v2158_v2, %v2014_v24  ;;  %v2775_v2 = vld [vmem:[%s4169_s6] ss:$0 sm:$0xff] }
 0x260   : > { %v2064_v3 = vpop.permute.xlu0 %2063  ;;  %v2175_v47 = vsel %vm2169_vm2, %v2166_v46, %v2034_v22 }
 0x261   : > { %v2184_v12 = vsel %vm2178_vm3, %v2175_v47, %v2062_v62 }
 0x264   : > { %v2036_v59 = vpop.permute.xlu0 %2035 }
 0x267   : > { %v1948_v52 = vpop.permute.xlu1 %1947 }
 0x268   : > { %v2144_v29 = vsel %vm793_vm5, %v2727_v50, %v1948_v52  ;;  %v2104_v33 = vpop.permute.xlu0 %2103 }
 0x269   : > { %v2152_v41 = vsel %vm815_vm7, %v2144_v29, %v1968_v35  ;;  %vm2395_vm7 = vcmask 1043456  }
 0x26a   : > { %v2160_v53 = vsel %vm832_vm9, %v2152_v41, %v1996_v13  ;;  %2871 = vmatprep.subr.msk.bf16.mxu1 %vm2395_vm7, %v2375_v48  ;;  %v2397_v11 = vsel %vm2395_vm7, %v2375_v48, 0 }
 0x26b   : > { %v2082_v4 = vpop.permute.xlu1 %2081  ;;  %2861 = vmatpush3.bf16.msra.mxu1 %v2397_v11 }
 0x26c   : > { %v2193_v51 = vsel %vm2187_vm4, %v2184_v12, %v2082_v4  ;;  %v2016_v61 = vpop.permute.xlu0 %2015 }
 0x26d   : > { %v2168_v28 = vsel %vm849_vm11, %v2160_v53, %v2016_v61  ;;  %v2202_v45 = vsel %vm2196_vm12, %v2193_v51, %v2102_v17 }
 0x26e   : > { %v2177_v8 = vsel %vm2169_vm2, %v2168_v28, %v2036_v59 }
 0x26f   : > { %v2130_v25 = vpop.permute.xlu1 %2129  ;;  %v2186_v63 = vsel %vm2178_vm3, %v2177_v8, %v2064_v3 }
 0x270   : > { %v2211_v50 = vsel %vm2205_vm13, %v2202_v45, %v2130_v25  ;;  %v2084_v30 = vpop.permute.xlu0 %2083 }
 0x271   : > { %2856 = vmatprep.mubr.msk.bf16.mxu1 %vm2253_vm14, %v2211_v50  ;;  %v2195_v1 = vsel %vm2187_vm4, %v2186_v63, %v2084_v30 }
 0x272   : > { %v2204_v10 = vsel %vm2196_vm12, %v2195_v1, %v2104_v33 }
 0x273   : > { %v2353_v7 = vpop.permute.xlu1 %2352 }
 0x274   : > { %v2132_v42 = vpop.permute.xlu0 %2131 }
 0x275   : > { %v2213_v32 = vsel %vm2205_vm13, %v2204_v10, %v2132_v42 }
 0x276   : > { %2857 = vmatmul.mubr.msk.bf16.gmra.mrb[4].mxu1 %vm2253_vm14, %v2213_v32 }
 0x325   : > { %v2854_v40 = vpop.f32.mrb[0].mxu1 }
 0x326   : > { %v2357_v56 = vadd.f32 %v2854_v40, %v2353_v7  ;;  %v2300_v18 = vpop.f32.mrb[1].mxu1  ;;  %v4031_v14 = vadd.f32 %v2854_v40, %v2773_v38 }
 0x327   : > { %v4029_v9 = vadd.f32 %v2773_v38, %v2300_v18  ;;  %v2855_v43 = vpop.f32.mrb[2].mxu1  ;;  %v2355_v21 = vadd.f32 %v2353_v7, %v2300_v18 }
 0x328   : > { %v4033_v60 = vadd.f32 %v2855_v43, %v2773_v38  ;;  %v2358_v23 = vadd.f32 %v2855_v43, %v2353_v7  ;;  %2492 = vrot.lane.b32.xlu0 %v2357_v56, %s3090_s24  ;;  %v2303_v15 = vpop.f32.mrb[3].mxu1  ;;  %v2365_v19 = vmul.f32 %v4031_v14, %v4031_v14 }
 0x329   : > { %v4036_v55 = vadd.f32 %v2773_v38, %v2303_v15  ;;  %v2363_v54 = vmul.f32 %v4029_v9, %v4029_v9  ;;  %v2356_v36 = vadd.f32 %v2353_v7, %v2303_v15 }
 0x32a   : > { %v2366_v0 = vmul.f32 %v4033_v60, %v4033_v60  ;;  %2494 = vrot.lane.b32.xlu1 %v2358_v23, %s3090_s24 }
 0x32b   : > { %v2364_v37 = vmul.f32 %v4036_v55, %v4036_v55 }
 0x32c   : > { %2488 = vrot.lane.b32.xlu0 %v2355_v21, %s3090_s24  ;;  %v2372_v6 = vpack.c.bf16 %v2366_v0, %v2365_v19 }
 0x32d   : > { %v2371_v49 = vpack.c.bf16 %v2364_v37, %v2363_v54 }
 0x32e   : > { %2490 = vrot.lane.b32.xlu1 %v2356_v36, %s3090_s24 }
 0x32f   : > { %2862 = vmatprep.mubr.msk.bf16.mxu1 %vm793_vm5, %v2371_v49 }
 0x330   : > { %2863 = vmatmul.mubr.msk.bf16.vlgmr.msra.gmra.mrb[8].mxu1 %vm793_vm5, %v2372_v6 }
 0x349   : > { %v2858_v26 = vpop.f32.mrb[4].mxu1 }
 0x34a   : > { %v2316_v58 = vpop.f32.mrb[5].mxu1  ;;  %v4053_v5 = vadd.f32 %v2858_v26, %v2773_v38  ;;  %v2361_v35 = vadd.f32 %v2858_v26, %v2353_v7 }
 0x34b   : > { %v4051_v20 = vadd.f32 %v2773_v38, %v2316_v58  ;;  %v2359_v44 = vadd.f32 %v2353_v7, %v2316_v58  ;;  %v2859_v27 = vpop.f32.mrb[6].mxu1 }
 0x34c   : > { %v4055_v31 = vadd.f32 %v2859_v27, %v2773_v38  ;;  %v2319_v62 = vpop.f32.mrb[7].mxu1  ;;  %v2369_v57 = vmul.f32 %v4053_v5, %v4053_v5  ;;  %v2362_v3 = vadd.f32 %v2859_v27, %v2353_v7 }
 0x34d   : > { %v4057_v34 = vadd.f32 %v2773_v38, %v2319_v62  ;;  %v2360_v39 = vadd.f32 %v2353_v7, %v2319_v62  ;;  %2496 = vrot.lane.b32.xlu0 %v2359_v44, %s3090_s24  ;;  %v2367_v17 = vmul.f32 %v4051_v20, %v4051_v20 }
 0x34e   : > { %v2370_v22 = vmul.f32 %v4055_v31, %v4055_v31 }
 0x34f   : > { %v2368_v13 = vmul.f32 %v4057_v34, %v4057_v34  ;;  %2498 = vrot.lane.b32.xlu1 %v2360_v39, %s3090_s24 }
 0x350   : > { %v2374_v24 = vpack.c.bf16 %v2370_v22, %v2369_v57 }
 0x351   : > { %v2373_v16 = vpack.c.bf16 %v2368_v13, %v2367_v17  ;;  %2500 = vrot.lane.b32.xlu0 %v2361_v35, %s3090_s24 }
 0x353   : > { %2502 = vrot.lane.b32.xlu1 %v2362_v3, %s3090_s24  ;;  %2866 = vmatprep.mubr.msk.bf16.mxu1 %vm793_vm5, %v2373_v16  ;;  %s2996_s24 = scalar_lea.vmem %s4108_s25, 1024 }
 0x354   : > { %2867 = vmatmul.mubr.msk.bf16.gmra.mrb[12].mxu1 %vm793_vm5, %v2374_v24  ;;  %p2997_p12 = scmp.ne.s32.totalorder %s4108_s25, %s2996_s24  ;;  %p3004_p2 = scmp.lt.s32.totalorder %s3002_s12, %s2996_s24 }
 0x356   : > { %p2998_p13 = pnand %p2997_p12, %p3178_p4  ;;  %p3005_p3 = por %p3004_p2, %p3003_p1 }
 0x358   : > { %p2999_p0 = pneg %p2998_p13 }
 0x35a   : > { %p3006_p5 = pnand %p3005_p3, %p2999_p0 }
 0x39a   : > { %v2493_v12 = vpop.permute.xlu0 %2492 }
 0x39c   : > { %v2495_v51 = vpop.permute.xlu1 %2494 }
 0x39e   : > { %v2489_v63 = vpop.permute.xlu0 %2488 }
 0x3a0   : > { %v2491_v42 = vpop.permute.xlu1 %2490 }
 0x403   : > { %v2864_v59 = vpop.f32.mrb[8].mxu1 }
 0x404   : > { %v2442_v46 = vadd.f32 %v2864_v59, %v2775_v2  ;;  %v2433_v52 = vpop.f32.mrb[9].mxu1 }
 0x405   : > { %v2434_v47 = vadd.f32 %v2775_v2, %v2433_v52  ;;  %v2865_v29 = vpop.f32.mrb[10].mxu1 }
 0x406   : > { %2978 = vrsqrt.f32 %v2442_v46  ;;  %v2445_v33 = vadd.f32 %v2865_v29, %v2775_v2  ;;  %v2436_v41 = vpop.f32.mrb[11].mxu1 }
 0x407   : > { %2980 = vrsqrt.f32 %v2434_v47  ;;  %v2437_v4 = vadd.f32 %v2775_v2, %v2436_v41 }
 0x408   : > { %2982 = vrsqrt.f32 %v2445_v33 }
 0x409   : > { %2984 = vrsqrt.f32 %v2437_v4 }
 0x410   : > { %v2979_v53 = vpop.eup %2978 }
 0x411   : > { %v2981_v61 = vpop.eup %2980  ;;  %v2474_v28 = vmul.f32 %v2979_v53, %v4031_v14  ;;  %v2497_v14 = vpop.permute.xlu0 %2496 }
 0x412   : > { %v2983_v8 = vpop.eup %2982  ;;  %v2472_v25 = vmul.f32 %v2981_v61, %v4029_v9 }
 0x413   : > { %v2985_v45 = vpop.eup %2984  ;;  %v2514_v50 = vadd.f32 %v2493_v12, %v2474_v28  ;;  %v2475_v30 = vmul.f32 %v2983_v8, %v4033_v60  ;;  %v2499_v60 = vpop.permute.xlu1 %2498 }
 0x414   : > { %v2512_v1 = vadd.f32 %v2489_v63, %v2472_v25  ;;  %v2473_v10 = vmul.f32 %v2985_v45, %v4036_v55 }
 0x415   : > { %2522 = vst.msk [vmem:[%s4083_s14 + $0x10] sm:$0xff] %vm793_vm5, %v2514_v50  ;;  %v2515_v32 = vadd.f32 %v2495_v51, %v2475_v30  ;;  %v2501_v0 = vpop.permute.xlu0 %2500 }
 0x416   : > { %2520 = vst.msk [vmem:[%s4083_s14] sm:$0xff] %vm793_vm5, %v2512_v1  ;;  %v2513_v48 = vadd.f32 %v2491_v42, %v2473_v10 }
 0x417   : > { %2523 = vst.msk [vmem:[%s4083_s14 + $0x18] sm:$0xff] %vm793_vm5, %v2515_v32  ;;  %v2503_v49 = vpop.permute.xlu1 %2502 }
 0x418   : > { %2521 = vst.msk [vmem:[%s4083_s14 + $0x8] sm:$0xff] %vm793_vm5, %v2513_v48 }
 0x427   : > { %v2868_v11 = vpop.f32.mrb[12].mxu1 }
 0x428   : > { %v2458_v7 = vadd.f32 %v2868_v11, %v2775_v2  ;;  %v2449_v38 = vpop.f32.mrb[13].mxu1 }
 0x429   : > { %v2450_v40 = vadd.f32 %v2775_v2, %v2449_v38  ;;  %v2869_v56 = vpop.f32.mrb[14].mxu1 }
 0x42a   : > { %2986 = vrsqrt.f32 %v2458_v7  ;;  %v2461_v18 = vadd.f32 %v2869_v56, %v2775_v2  ;;  %v2452_v9 = vpop.f32.mrb[15].mxu1 }
 0x42b   : > { %2988 = vrsqrt.f32 %v2450_v40  ;;  %v2453_v43 = vadd.f32 %v2775_v2, %v2452_v9 }
 0x42c   : > { %2990 = vrsqrt.f32 %v2461_v18 }
 0x42d   : > { %2992 = vrsqrt.f32 %v2453_v43 }
 0x434   : > { %v2987_v23 = vpop.eup %2986 }
 0x435   : > { %v2989_v15 = vpop.eup %2988  ;;  %v2478_v55 = vmul.f32 %v2987_v23, %v4053_v5 }
 0x436   : > { %v2991_v21 = vpop.eup %2990  ;;  %v2476_v54 = vmul.f32 %v2989_v15, %v4051_v20 }
 0x437   : > { %v2993_v37 = vpop.eup %2992  ;;  %v2518_v19 = vadd.f32 %v2501_v0, %v2478_v55  ;;  %v2479_v36 = vmul.f32 %v2991_v21, %v4055_v31 }
 0x438   : > { %v2516_v6 = vadd.f32 %v2497_v14, %v2476_v54  ;;  %v2477_v26 = vmul.f32 %v2993_v37, %v4057_v34 }
 0x439   : > { %2526 = vst.msk [vmem:[%s4083_s14 + $0x30] sm:$0xff] %vm793_vm5, %v2518_v19  ;;  %v2519_v58 = vadd.f32 %v2503_v49, %v2479_v36 }
 0x43a   : > { %2524 = vst.msk [vmem:[%s4083_s14 + $0x20] sm:$0xff] %vm793_vm5, %v2516_v6  ;;  %v2517_v20 = vadd.f32 %v2499_v60, %v2477_v26 }
 0x43b   : > { %2527 = vst.msk [vmem:[%s4083_s14 + $0x38] sm:$0xff] %vm793_vm5, %v2519_v58 }
 0x43c   : > { %2525 = vst.msk [vmem:[%s4083_s14 + $0x28] sm:$0xff] %vm793_vm5, %v2517_v20 }
 0x43d   : > { %3009 = shalt.err (!%p3006_p5)
}
 0x43e   : > { %s3010_s11 = scalar_lea.hbm %s4104_s22, 1024  ;;  %s3014_s20 = scalar_lea.hbm %s4171_s8, 2048 }
 0x43f   : > { %p3011_p6 = scmp.ne.s32.totalorder %s4104_s22, %s3010_s11  ;;  %p3015_p10 = scmp.lt.u32.totalorder %s4104_s22, %s4171_s8 }
 0x440   : > { %p3016_p11 = scmp.lt.u32.totalorder %s3014_s20, %s3010_s11  ;;  %p3018_p13 = scmp.lt.u32.totalorder %s3010_s11, %s4104_s22 }
 0x441   : > { %p3012_p7 = pnand %p3011_p6, %p3178_p4 }
 0x442   : > { %p3017_p12 = por %p3016_p11, %p3015_p10 }
 0x443   : > { %p3013_p9 = pneg %p3012_p7 }
 0x444   : > { %p3019_p0 = por %p3018_p13, %p3017_p12 }
 0x446   : > { %p3020_p1 = pnand %p3019_p0, %p3013_p9 }
 0x448   : > { %3023 = shalt.err (!%p3020_p1)
}
 0x449   : > { %s3092_s24 = smov 128  }
 0x44a   : > { %2873 = dma.vmem_to_hbm [thread:$0]  (%p3178_p4), %s4108_s25, 1024, %s4104_s22, %s4116_s30, %s3092_s24, %s3092_s24, %s3080_s19  }
 0x44b PF: > { %p2879_p2 = scmp.ge.s32.totalorder %s3074_s10, 2  ;;  %s2559_s16 = sand.u32 1, %s3054_s27  }
 0x44c   : > { %s2560_s12 = scalar_lea.sflag [#allocation4], %s2559_s16 }
 0x44d   : > { %p2876_p3 = pnand %p2879_p2, %p3185_p8 }
 0x44f   : > { %3049 = dma.done.wait (!%p2876_p3), %s2560_s12, 1024  }
 0x450   : > { %3051 = vsyncadd (!%p2876_p3), %s2560_s12, 4294966272  ;;  %s21_s10 = sadd.s32 1, %s3074_s10   ;;  %s4184_s27 = smov %s3058_s28 }
 0x451   : > { %p18_p5 = scmp.ge.s32.totalorder %s21_s10, 4   ;;  %s4185_s28 = smov %s3062_s29 }
 0x452   : > { %s4186_s29 = smov %s3191_s18  ;;  %s4187_s30 = smov %s3070_s9 }
 0x453   : > { %s4188_s9 = smov %s4190_s13  ;;  %20 = sbr.rel (!%p18_p5) target bundleno = 4 (0x4), region = 90 }
 0x45a   :  { %2565 = vsyncpa [#allocation4], 1 }
 0x45b   :  { %2567 = vsyncpa [#allocation4 + $0x1], 1 }

</bundles_post_ra>
